<compile_context>
chip_gen: v7x
topology: tpu7x:2x2x1
jax: 0.10.0
libtpu: 0.0.40
codegen_flags: <defaults>
</compile_context>

<pallas_src>
import jax
import jax.numpy as jnp
from jax.experimental import pallas as pl
from jax.experimental.pallas import tpu as pltpu

V = 128            # stand-in MANO vertex count (real MANO: 778 -> pad to 896)
NJ = 21            # single-hand joint count
ROOT_IDX = 20      # mano.sh_root_joint_idx stand-in (wrist)
P_PAD = 64         # per-hand rotation block width (58 params + cam + rel_trans)
FEAT = 128         # backbone feature width
ROT_OUT = 128      # compact rotation-net output width
IMG_C, IMG_H, IMG_W = 3, 32, 32


# ---------------------------------------------------------------------------
# Single fused forward kernel
# ---------------------------------------------------------------------------
def _fused_forward_kernel(x_ref, bb_w_ref, head_w_ref, head_b_ref, rot_w_ref,
                          geo_b_ref, geo_hbm_ref,
                          misc_ref, geo_out_ref,
                          geo_w_vmem, geo_sem):
    f32 = jnp.float32
    bf16 = jnp.bfloat16

    # Prefetch the geometry weight while the upstream matmuls run (hides its
    # HBM->VMEM transfer behind compute on all generations).
    geo_cp = pltpu.make_async_copy(geo_hbm_ref, geo_w_vmem, geo_sem)
    geo_cp.start()

    # ---- backbone stand-in (its bias is folded into head_b at init) ----
    img_feat = jnp.dot(x_ref[...], bb_w_ref[...], preferred_element_type=f32)

    # ---- hand_feature_extra: head = [hf_l | hf_r | ljoint_img | rjoint_img | 1 | 0] ----
    head = (jnp.dot(img_feat.astype(bf16), head_w_ref[...],
                    preferred_element_type=f32) + head_b_ref[...])
    misc_ref[1] = head[:, 2 * FEAT:2 * FEAT + 128]          # joint_img slab (126 live lanes)

    # ---- rotation_net (prior_feat + bias folded into rot_w at init) ----
    # TODO(synk): .detach() on joint_img is a no-op in the forward pass.
    rot = jnp.dot(head.astype(bf16), rot_w_ref[...], preferred_element_type=f32)
    misc_ref[0] = rot

    # ---- get_coord for both hands ----
    geo_cp.wait()
    rot_bf = rot.astype(bf16)

    for h in range(2):                                      # 0 = right, 1 = left (unrolled)
        blk = rot_bf[:, h * P_PAD:(h + 1) * P_PAD]          # per-hand 64-wide block
        # geo = [mesh x | mesh y | mesh z | joint x | joint y | joint z], 128 lanes / plane
        geo = (jnp.dot(blk, geo_w_vmem[h], preferred_element_type=f32)
               + geo_b_ref[h])
        mx = geo[:, 0 * V:1 * V]
        my = geo[:, 1 * V:2 * V]
        mz = geo[:, 2 * V:3 * V]
        jx = geo[:, 3 * V:4 * V]
        jy = geo[:, 4 * V:5 * V]
        jz = geo[:, 5 * V:6 * V]

        cam = rot[:, h * P_PAD + 58:h * P_PAD + 61]         # (B, 3) = f, tx, ty
        f = cam[:, 0:1]
        tx = cam[:, 1:2]
        ty = cam[:, 2:3]

        # camera projection uses the UNcentered joints (matches reference order)
        geo_out_ref[2 * h + 0] = jx * f + tx
        geo_out_ref[2 * h + 1] = jy * f + ty

        # root-relative centering.  Lanes >= NJ of jx/jy/jz are exactly 0 (the
        # joint-regressor padding is zero), so the centered planes carry -root
        # there and the wrapper recovers root_cam without extra stores.
        rx = jx[:, ROOT_IDX:ROOT_IDX + 1]
        ry = jy[:, ROOT_IDX:ROOT_IDX + 1]
        rz = jz[:, ROOT_IDX:ROOT_IDX + 1]
        geo_out_ref[4 + 3 * h + 0] = jx - rx
        geo_out_ref[4 + 3 * h + 1] = jy - ry
        geo_out_ref[4 + 3 * h + 2] = jz - rz
        geo_out_ref[10 + 3 * h + 0] = mx - rx
        geo_out_ref[10 + 3 * h + 1] = my - ry
        geo_out_ref[10 + 3 * h + 2] = mz - rz


def _fused_forward(params, x_flat_bf16):
    BP = x_flat_bf16.shape[0]
    vmem = lambda: pl.BlockSpec(memory_space=pltpu.MemorySpace.VMEM)
    # v7x note: gridless -> single TensorCore; at this batch size the kernel is
    # weight-DMA bound so a core split would only duplicate the weight DMA.
    return pl.pallas_call(
        _fused_forward_kernel,
        out_shape=(
            jax.ShapeDtypeStruct((2, BP, 128), jnp.float32),   # [rot | joint_img]
            jax.ShapeDtypeStruct((16, BP, V), jnp.float32),    # [proj(4) | joint_cam(6) | mesh_cam(6)]
        ),
        in_specs=[vmem(), vmem(), vmem(), vmem(), vmem(), vmem(),
                  pl.BlockSpec(memory_space=pl.ANY)],           # geo weight stays in HBM
        out_specs=(vmem(), vmem()),
        scratch_shapes=[pltpu.VMEM((2, P_PAD, 6 * V), jnp.bfloat16),
                        pltpu.SemaphoreType.DMA],
    )(x_flat_bf16,
      params['backbone_w'], params['head_w'], params['head_b'],
      params['rot_w'], params['geo_b'], params['geo_w'])


# ---------------------------------------------------------------------------
# Deterministic parameter initialization (synthetic, no checkpoint)
# ---------------------------------------------------------------------------
def init_params(key):
    ks = jax.random.split(key, 16)

    def w(k, shape, scale=0.02):
        return jax.random.normal(k, shape, dtype=jnp.float32) * scale

    CHW = IMG_C * IMG_H * IMG_W
    p = {}

    # backbone stand-in (largest weight -> bf16 halves its HBM->VMEM DMA)
    bb_w = w(ks[0], (CHW, FEAT))
    bb_b = jnp.zeros((1, FEAT), jnp.float32)
    p['backbone_w'] = bb_w.astype(jnp.bfloat16)                      # (3072, 128)

    # hand_feature_extra head, column-fused:
    # [hand_feat_l (128) | hand_feat_r (128) | ljoint_img (63) | rjoint_img (63) | const 1 | 0]
    hfl_w = w(ks[1], (FEAT, FEAT))
    hfr_w = w(ks[2], (FEAT, FEAT))
    ljimg_w = w(ks[3], (FEAT, NJ * 3))
    rjimg_w = w(ks[4], (FEAT, NJ * 3))
    head_w = jnp.concatenate(
        [hfl_w, hfr_w, ljimg_w, rjimg_w, jnp.zeros((FEAT, 2), jnp.float32)], axis=1)
    head_b_raw = jnp.zeros((1, 3 * FEAT), jnp.float32)
    # backbone bias folded into head bias (exact for linear stand-in); column 382
    # is a constant 1.0 that carries the rotation-net bias through rot_w.
    head_b = (head_b_raw + bb_b @ head_w).at[0, 382].set(1.0)
    p['head_w'] = head_w.astype(jnp.bfloat16)                        # (128, 384)
    p['head_b'] = head_b                                             # (1, 384)

    # prior_feat stand-in (block-diagonal over [hf_l | hf_r]) — folded below.
    pl_w = w(ks[5], (FEAT, FEAT))
    pr_w = w(ks[6], (FEAT, FEAT))
    z = jnp.zeros((FEAT, FEAT), jnp.float32)
    prior_w = jnp.block([[pl_w, z], [z, pr_w]])                      # (256, 256)
    prior_b = jnp.zeros((1, 2 * FEAT), jnp.float32)

    # rotation_net stand-in, compact 128-wide output layout:
    #   right block 0:64   -> 0:58  MANO params | 58:61 rcam | 61:64 rel_trans
    #   left  block 64:128 -> 64:122 MANO params | 122:125 lcam | 125:128 pad
    col = jnp.arange(ROT_OUT)
    live = (col < 125).astype(jnp.float32)[None, :]
    rot_w_hf = w(ks[7], (2 * FEAT, ROT_OUT)) * live
    rot_w_ji = w(ks[8], (2 * NJ * 3, ROT_OUT)) * live
    rot_w_pr = w(ks[9], (2 * FEAT, ROT_OUT)) * live
    rot_b = jnp.zeros((1, ROT_OUT), jnp.float32)

    # Fold prior_feat into the rotation net (exact while prior_feat is linear),
    # then fuse the hf / joint_img weights into one (384, 128) weight applied
    # directly to `head`; row 382 (the constant-1 column) carries the bias.
    rot_w_hf_folded = rot_w_hf + prior_w @ rot_w_pr
    rot_b_folded = rot_b + prior_b @ rot_w_pr
    rot_w = jnp.zeros((3 * FEAT, ROT_OUT), jnp.float32)
    rot_w = rot_w.at[0:2 * FEAT].set(rot_w_hf_folded)
    rot_w = rot_w.at[2 * FEAT:2 * FEAT + 2 * NJ * 3].set(rot_w_ji)
    rot_w = rot_w.at[382].set(rot_b_folded[0])
    p['rot_w'] = rot_w.astype(jnp.bfloat16)                          # (384, 128)

    # Linearized MANO stand-in + joint regressor, per-hand split, bf16:
    #   geo_h = rot[:, h*64:(h+1)*64] @ geo_w[h] + geo_b[h]
    #         = [verts XYZ | joints XYZ] (128 lanes / plane)
    # TODO(synk): real MANO LBS is nonlinear; this folding only holds for the
    # linear stand-in.
    mano_r_w = w(ks[10], (58, 3 * V), 0.01)
    mano_r_t = w(ks[11], (1, 3 * V), 0.1)
    mano_l_w = w(ks[12], (58, 3 * V), 0.01)
    mano_l_t = w(ks[13], (1, 3 * V), 0.1)
    jreg = jax.random.uniform(ks[14], (NJ, V), dtype=jnp.float32)
    jreg = jreg / jnp.sum(jreg, axis=1, keepdims=True)               # convex regressor rows
    jregT_pad = jnp.zeros((V, V), jnp.float32).at[:, 0:NJ].set(jnp.transpose(jreg))

    def fold_jreg(m):                                                # (R,3V) verts -> (R,3V) joints
        return jnp.concatenate([m[:, k * V:(k + 1) * V] @ jregT_pad for k in range(3)], axis=1)

    def hand_geo(mw, mt):
        wv = jnp.zeros((P_PAD, 3 * V), jnp.float32).at[0:58].set(mw)  # rows 58:64 (cam) stay zero
        w_full = jnp.concatenate([wv, fold_jreg(wv)], axis=1)         # (64, 768)
        b_full = jnp.concatenate([mt, fold_jreg(mt)], axis=1)         # (1, 768) template
        return w_full, b_full

    wr, br = hand_geo(mano_r_w, mano_r_t)
    wl, bl = hand_geo(mano_l_w, mano_l_t)
    p['geo_w'] = jnp.stack([wr, wl]).astype(jnp.bfloat16)             # (2, 64, 768) bf16
    p['geo_b'] = jnp.stack([br, bl])                                  # (2, 1, 768) f32
    return p


# ---------------------------------------------------------------------------
# Jitted core forward (kernel + slice/transpose epilogue in ONE dispatch)
# ---------------------------------------------------------------------------
@jax.jit
def _forward_core(params, img):
    B = img.shape[0]
    BP = -(-B // 16) * 16                           # pad batch to bf16 sublane height
    x = img.reshape(B, -1).astype(jnp.bfloat16)     # row-major flatten (like .view)
    x = jnp.pad(x, ((0, BP - B), (0, 0)))

    misc, geo = _fused_forward(params, x)
    rot = misc[0, :B]                               # (B, 128)
    jimg = misc[1, :B]                              # (B, 128)
    geo = geo[:, :B]                                # (16, B, 128)

    o = {}
    # rotation-net output slices (compact 128-lane layout)
    o['rroot_pose'] = rot[:, 0:3]
    o['rhand_pose'] = rot[:, 3:48]
    o['rshape'] = rot[:, 48:58]
    o['rel_trans'] = rot[:, 61:64]
    o['lroot_pose'] = rot[:, 64:67]
    o['lhand_pose'] = rot[:, 67:112]
    o['lshape'] = rot[:, 112:122]

    o['ljoint_img'] = jimg[:, 0:NJ * 3].reshape(B, NJ, 3)
    o['rjoint_img'] = jimg[:, NJ * 3:2 * NJ * 3].reshape(B, NJ, 3)

    # geometry: lane-dense plane slabs -> PyTorch (B, N, C) layout
    proj = jnp.transpose(geo[0:4, :, :NJ], (1, 2, 0))        # (B, NJ, 4) [rx, ry, lx, ly]
    o['rjoint_proj'], o['ljoint_proj'] = proj[..., 0:2], proj[..., 2:4]
    jc = jnp.transpose(geo[4:10, :, :NJ], (1, 2, 0))         # (B, NJ, 6)
    o['rjoint_cam'], o['ljoint_cam'] = jc[..., 0:3], jc[..., 3:6]
    mesh = jnp.transpose(geo[10:16], (1, 2, 0))              # (B, V, 6)
    o['rmesh_cam'], o['lmesh_cam'] = mesh[..., 0:3], mesh[..., 3:6]
    # root_cam recovered from lane NJ of the centered joint planes (== -root there)
    root = -jnp.transpose(geo[4:10, :, NJ:NJ + 1], (1, 2, 0))  # (B, 1, 6)
    o['rroot_cam'], o['lroot_cam'] = root[..., 0:3], root[..., 3:6]
    return o


# ---------------------------------------------------------------------------
# Model forward (reproduces the PyTorch forward structure)
# ---------------------------------------------------------------------------
def model_forward(params, inputs, targets, meta_info, mode='test'):
    o = _forward_core(params, inputs['img'])

    if mode == 'train':
        # TODO(synk): CoordLossL1 / ParamLossL1 are external modules; masked-L1 stand-in.
        def masked_l1(pred, tgt, valid):
            return jnp.abs(pred - tgt) * valid
        mano_pose = jnp.concatenate([o['rroot_pose'], o['rhand_pose'],
                                     o['lroot_pose'], o['lhand_pose']], axis=1)
        mano_shape = jnp.concatenate([o['rshape'], o['lshape']], axis=1)
        joint_cam = jnp.concatenate([o['rjoint_cam'], o['ljoint_cam']], axis=1)
        joint_img = jnp.concatenate([o['rjoint_img'], o['ljoint_img']], axis=1)
        joint_proj = jnp.concatenate([o['rjoint_proj'], o['ljoint_proj']], axis=1)
        loss = {}
        loss['rel_trans'] = masked_l1(o['rel_trans'][:, None, :], targets['rel_trans'][:, None, :],
                                      meta_info['rel_trans_valid'][:, None, :])
        loss['mano_pose'] = masked_l1(mano_pose, targets['mano_pose'], meta_info['mano_param_valid'])
        loss['mano_shape'] = masked_l1(mano_shape, targets['mano_shape'], meta_info['mano_shape_valid'])
        loss['joint_cam'] = masked_l1(joint_cam, targets['joint_cam'],
                                      meta_info['joint_valid'] * meta_info['is_3D'][:, None, None]) * 10
        loss['mano_joint_cam'] = masked_l1(joint_cam, targets['mano_joint_cam'],
                                           meta_info['mano_joint_valid']) * 10
        loss['joint_img'] = masked_l1(joint_img, targets['joint_img'], meta_info['joint_trunc'])
        loss['mano_joint_img'] = masked_l1(joint_img, targets['mano_joint_img'], meta_info['mano_joint_trunc'])
        loss['joint_proj'] = masked_l1(joint_proj, targets['joint_img'][:, :, :2], meta_info['joint_valid'])
        return loss

    out = {}
    out['img'] = inputs['img']
    out['rel_trans'] = o['rel_trans']
    out['lmano_mesh_cam'] = o['lmesh_cam']
    out['rmano_mesh_cam'] = o['rmesh_cam']
    out['lmano_root_cam'] = o['lroot_cam']
    out['rmano_root_cam'] = o['rroot_cam']
    out['lmano_joint_cam'] = o['ljoint_cam']
    out['rmano_joint_cam'] = o['rjoint_cam']
    out['lmano_root_pose'] = o['lroot_pose']
    out['rmano_root_pose'] = o['rroot_pose']
    out['lmano_hand_pose'] = o['lhand_pose']
    out['rmano_hand_pose'] = o['rhand_pose']
    out['lmano_shape'] = o['lshape']
    out['rmano_shape'] = o['rshape']
    out['lmano_joint'] = o['ljoint_proj']
    out['rmano_joint'] = o['rjoint_proj']
    if 'mano_joint_img' in targets:
        out['mano_joint_img'] = targets['mano_joint_img']
    if 'bb2img_trans' in meta_info:
        out['bb2img_trans'] = meta_info['bb2img_trans']
    if 'mano_mesh_cam' in targets:
        out['mano_mesh_cam_target'] = targets['mano_mesh_cam']
    if 'do_flip' in meta_info:
        out['do_flip'] = meta_info['do_flip']
    return out


if __name__ == "__main__":
    key = jax.random.PRNGKey(0)
    k_params, k_img = jax.random.split(key)
    params = init_params(k_params)

    B = 2
    img = jax.random.normal(k_img, (B, IMG_C, IMG_H, IMG_W), dtype=jnp.float32)
    inputs = {'img': img}
    targets = {}
    meta_info = {}

    out = model_forward(params, inputs, targets, meta_info, mode='test')
    out = jax.block_until_ready(out)

    # sanity checks on output shapes / dtypes
    assert out['rmano_mesh_cam'].shape == (B, V, 3)
    assert out['lmano_joint_cam'].shape == (B, NJ, 3)
    assert out['rmano_joint'].shape == (B, NJ, 2)
    assert out['rmano_root_cam'].shape == (B, 1, 3)
    assert out['rel_trans'].shape == (B, 3)
    assert out['rmano_hand_pose'].shape == (B, 45)
    assert out['lmano_shape'].shape == (B, 10)
    assert out['rmano_mesh_cam'].dtype == jnp.float32

    print("KERNEL_OK")
</pallas_src>

<mosaic_0001>
module attributes {stable_mosaic.version = 11 : i64} {
  func.func @_fused_forward_kernel(%arg0: memref<16x3072xbf16, #tpu.memory_space<vmem>>, %arg1: memref<3072x128xbf16, #tpu.memory_space<vmem>>, %arg2: memref<128x384xbf16, #tpu.memory_space<vmem>>, %arg3: memref<1x384xf32, #tpu.memory_space<vmem>>, %arg4: memref<384x128xbf16, #tpu.memory_space<vmem>>, %arg5: memref<2x1x768xf32, #tpu.memory_space<vmem>>, %arg6: memref<2x64x768xbf16, #tpu.memory_space<any>>, %arg7: memref<2x16x128xf32, #tpu.memory_space<vmem>>, %arg8: memref<16x16x128xf32, #tpu.memory_space<vmem>>, %arg9: memref<2x64x768xbf16, #tpu.memory_space<vmem>>, %arg10: memref<!tpu.dma_semaphore, #tpu.memory_space<semaphore_mem>>) attributes {dimension_semantics = [], scalar_prefetch = 0 : i64, scratch_operands = 2 : i64, tpu.core_type = #tpu.core_type<tc>} {
    tpu.enqueue_dma source(%arg6 : memref<2x64x768xbf16, #tpu.memory_space<any>>) target(%arg9 : memref<2x64x768xbf16, #tpu.memory_space<vmem>>) target_semaphore(%arg10 : memref<!tpu.dma_semaphore, #tpu.memory_space<semaphore_mem>>)
    %c0 = arith.constant 0 : index
    %c0_0 = arith.constant 0 : index
    %0 = vector.load %arg0[%c0, %c0_0] : memref<16x3072xbf16, #tpu.memory_space<vmem>>, vector<16x3072xbf16>
    %c0_1 = arith.constant 0 : index
    %c0_2 = arith.constant 0 : index
    %1 = vector.load %arg1[%c0_1, %c0_2] : memref<3072x128xbf16, #tpu.memory_space<vmem>>, vector<3072x128xbf16>
    %cst = arith.constant dense<0.000000e+00> : vector<16x128xf32>
    %2 = tpu.matmul %0, %1, %cst {dimension_numbers = #tpu.dot_dimension_numbers<[1], [0], [0], [1], [0, 0, 1, 1], [], []>} : vector<16x3072xbf16>, vector<3072x128xbf16>, vector<16x128xf32> -> vector<16x128xf32>
    %3 = arith.truncf %2 : vector<16x128xf32> to vector<16x128xbf16>
    %c0_3 = arith.constant 0 : index
    %c0_4 = arith.constant 0 : index
    %4 = vector.load %arg2[%c0_3, %c0_4] : memref<128x384xbf16, #tpu.memory_space<vmem>>, vector<128x384xbf16>
    %cst_5 = arith.constant dense<0.000000e+00> : vector<16x384xf32>
    %5 = tpu.matmul %3, %4, %cst_5 {dimension_numbers = #tpu.dot_dimension_numbers<[1], [0], [0], [1], [0, 0, 1, 1], [], []>} : vector<16x128xbf16>, vector<128x384xbf16>, vector<16x384xf32> -> vector<16x384xf32>
    %c0_6 = arith.constant 0 : index
    %c0_7 = arith.constant 0 : index
    %6 = vector.load %arg3[%c0_6, %c0_7] : memref<1x384xf32, #tpu.memory_space<vmem>>, vector<1x384xf32>
    %7 = vector.broadcast %6 : vector<1x384xf32> to vector<16x384xf32>
    %8 = arith.addf %5, %7 : vector<16x384xf32>
    %9 = vector.extract_strided_slice %8 {offsets = [0, 256], sizes = [16, 128], strides = [1, 1]} : vector<16x384xf32> to vector<16x128xf32>
    %c1 = arith.constant 1 : index
    %c0_8 = arith.constant 0 : index
    %c0_9 = arith.constant 0 : index
    %10 = vector.load %arg7[%c1, %c0_8, %c0_9] : memref<2x16x128xf32, #tpu.memory_space<vmem>>, vector<1x16x128xf32>
    %11 = vector.shape_cast %10 : vector<1x16x128xf32> to vector<16x128xf32>
    %12 = vector.shape_cast %9 : vector<16x128xf32> to vector<1x16x128xf32>
    tpu.vector_store %arg7[%c1, %c0_8, %c0_9], %12 {strides = array<i32>} : memref<2x16x128xf32, #tpu.memory_space<vmem>>, vector<1x16x128xf32>,
    %13 = arith.truncf %8 : vector<16x384xf32> to vector<16x384xbf16>
    %c0_10 = arith.constant 0 : index
    %c0_11 = arith.constant 0 : index
    %14 = vector.load %arg4[%c0_10, %c0_11] : memref<384x128xbf16, #tpu.memory_space<vmem>>, vector<384x128xbf16>
    %cst_12 = arith.constant dense<0.000000e+00> : vector<16x128xf32>
    %15 = tpu.matmul %13, %14, %cst_12 {dimension_numbers = #tpu.dot_dimension_numbers<[1], [0], [0], [1], [0, 0, 1, 1], [], []>} : vector<16x384xbf16>, vector<384x128xbf16>, vector<16x128xf32> -> vector<16x128xf32>
    %c0_13 = arith.constant 0 : index
    %c0_14 = arith.constant 0 : index
    %c0_15 = arith.constant 0 : index
    %16 = vector.load %arg7[%c0_13, %c0_14, %c0_15] : memref<2x16x128xf32, #tpu.memory_space<vmem>>, vector<1x16x128xf32>
    %17 = vector.shape_cast %16 : vector<1x16x128xf32> to vector<16x128xf32>
    %18 = vector.shape_cast %15 : vector<16x128xf32> to vector<1x16x128xf32>
    tpu.vector_store %arg7[%c0_13, %c0_14, %c0_15], %18 {strides = array<i32>} : memref<2x16x128xf32, #tpu.memory_space<vmem>>, vector<1x16x128xf32>,
    tpu.wait_dma2 semaphore(%arg10 : memref<!tpu.dma_semaphore, #tpu.memory_space<semaphore_mem>>) src(%arg6 : memref<2x64x768xbf16, #tpu.memory_space<any>>) dst(%arg9 : memref<2x64x768xbf16, #tpu.memory_space<vmem>>)
    %19 = arith.truncf %15 : vector<16x128xf32> to vector<16x128xbf16>
    %20 = vector.extract_strided_slice %19 {offsets = [0, 0], sizes = [16, 64], strides = [1, 1]} : vector<16x128xbf16> to vector<16x64xbf16>
    %c0_16 = arith.constant 0 : index
    %c0_17 = arith.constant 0 : index
    %c0_18 = arith.constant 0 : index
    %21 = vector.load %arg9[%c0_16, %c0_17, %c0_18] : memref<2x64x768xbf16, #tpu.memory_space<vmem>>, vector<1x64x768xbf16>
    %22 = vector.shape_cast %21 : vector<1x64x768xbf16> to vector<64x768xbf16>
    %cst_19 = arith.constant dense<0.000000e+00> : vector<16x768xf32>
    %23 = tpu.matmul %20, %22, %cst_19 {dimension_numbers = #tpu.dot_dimension_numbers<[1], [0], [0], [1], [0, 0, 1, 1], [], []>} : vector<16x64xbf16>, vector<64x768xbf16>, vector<16x768xf32> -> vector<16x768xf32>
    %c0_20 = arith.constant 0 : index
    %c0_21 = arith.constant 0 : index
    %c0_22 = arith.constant 0 : index
    %24 = vector.load %arg5[%c0_20, %c0_21, %c0_22] : memref<2x1x768xf32, #tpu.memory_space<vmem>>, vector<1x1x768xf32>
    %25 = vector.shape_cast %24 : vector<1x1x768xf32> to vector<1x768xf32>
    %26 = vector.broadcast %25 : vector<1x768xf32> to vector<16x768xf32>
    %27 = arith.addf %23, %26 : vector<16x768xf32>
    %28 = vector.extract_strided_slice %27 {offsets = [0, 0], sizes = [16, 128], strides = [1, 1]} : vector<16x768xf32> to vector<16x128xf32>
    %29 = vector.extract_strided_slice %27 {offsets = [0, 128], sizes = [16, 128], strides = [1, 1]} : vector<16x768xf32> to vector<16x128xf32>
    %30 = vector.extract_strided_slice %27 {offsets = [0, 256], sizes = [16, 128], strides = [1, 1]} : vector<16x768xf32> to vector<16x128xf32>
    %31 = vector.extract_strided_slice %27 {offsets = [0, 384], sizes = [16, 128], strides = [1, 1]} : vector<16x768xf32> to vector<16x128xf32>
    %32 = vector.extract_strided_slice %27 {offsets = [0, 512], sizes = [16, 128], strides = [1, 1]} : vector<16x768xf32> to vector<16x128xf32>
    %33 = vector.extract_strided_slice %27 {offsets = [0, 640], sizes = [16, 128], strides = [1, 1]} : vector<16x768xf32> to vector<16x128xf32>
    %34 = vector.extract_strided_slice %15 {offsets = [0, 58], sizes = [16, 3], strides = [1, 1]} : vector<16x128xf32> to vector<16x3xf32>
    %35 = vector.extract_strided_slice %34 {offsets = [0, 0], sizes = [16, 1], strides = [1, 1]} : vector<16x3xf32> to vector<16x1xf32>
    %36 = vector.extract_strided_slice %34 {offsets = [0, 1], sizes = [16, 1], strides = [1, 1]} : vector<16x3xf32> to vector<16x1xf32>
    %37 = vector.extract_strided_slice %34 {offsets = [0, 2], sizes = [16, 1], strides = [1, 1]} : vector<16x3xf32> to vector<16x1xf32>
    %38 = vector.broadcast %35 : vector<16x1xf32> to vector<16x128xf32>
    %39 = arith.mulf %31, %38 : vector<16x128xf32>
    %40 = vector.broadcast %36 : vector<16x1xf32> to vector<16x128xf32>
    %41 = arith.addf %39, %40 : vector<16x128xf32>
    %c0_23 = arith.constant 0 : index
    %c0_24 = arith.constant 0 : index
    %c0_25 = arith.constant 0 : index
    %42 = vector.load %arg8[%c0_23, %c0_24, %c0_25] : memref<16x16x128xf32, #tpu.memory_space<vmem>>, vector<1x16x128xf32>
    %43 = vector.shape_cast %42 : vector<1x16x128xf32> to vector<16x128xf32>
    %44 = vector.shape_cast %41 : vector<16x128xf32> to vector<1x16x128xf32>
    tpu.vector_store %arg8[%c0_23, %c0_24, %c0_25], %44 {strides = array<i32>} : memref<16x16x128xf32, #tpu.memory_space<vmem>>, vector<1x16x128xf32>,
    %45 = vector.broadcast %35 : vector<16x1xf32> to vector<16x128xf32>
    %46 = arith.mulf %32, %45 : vector<16x128xf32>
    %47 = vector.broadcast %37 : vector<16x1xf32> to vector<16x128xf32>
    %48 = arith.addf %46, %47 : vector<16x128xf32>
    %c1_26 = arith.constant 1 : index
    %c0_27 = arith.constant 0 : index
    %c0_28 = arith.constant 0 : index
    %49 = vector.load %arg8[%c1_26, %c0_27, %c0_28] : memref<16x16x128xf32, #tpu.memory_space<vmem>>, vector<1x16x128xf32>
    %50 = vector.shape_cast %49 : vector<1x16x128xf32> to vector<16x128xf32>
    %51 = vector.shape_cast %48 : vector<16x128xf32> to vector<1x16x128xf32>
    tpu.vector_store %arg8[%c1_26, %c0_27, %c0_28], %51 {strides = array<i32>} : memref<16x16x128xf32, #tpu.memory_space<vmem>>, vector<1x16x128xf32>,
    %52 = vector.extract_strided_slice %31 {offsets = [0, 20], sizes = [16, 1], strides = [1, 1]} : vector<16x128xf32> to vector<16x1xf32>
    %53 = vector.extract_strided_slice %32 {offsets = [0, 20], sizes = [16, 1], strides = [1, 1]} : vector<16x128xf32> to vector<16x1xf32>
    %54 = vector.extract_strided_slice %33 {offsets = [0, 20], sizes = [16, 1], strides = [1, 1]} : vector<16x128xf32> to vector<16x1xf32>
    %55 = vector.broadcast %52 : vector<16x1xf32> to vector<16x128xf32>
    %56 = arith.subf %31, %55 : vector<16x128xf32>
    %c4 = arith.constant 4 : index
    %c0_29 = arith.constant 0 : index
    %c0_30 = arith.constant 0 : index
    %57 = vector.load %arg8[%c4, %c0_29, %c0_30] : memref<16x16x128xf32, #tpu.memory_space<vmem>>, vector<1x16x128xf32>
    %58 = vector.shape_cast %57 : vector<1x16x128xf32> to vector<16x128xf32>
    %59 = vector.shape_cast %56 : vector<16x128xf32> to vector<1x16x128xf32>
    tpu.vector_store %arg8[%c4, %c0_29, %c0_30], %59 {strides = array<i32>} : memref<16x16x128xf32, #tpu.memory_space<vmem>>, vector<1x16x128xf32>,
    %60 = vector.broadcast %53 : vector<16x1xf32> to vector<16x128xf32>
    %61 = arith.subf %32, %60 : vector<16x128xf32>
    %c5 = arith.constant 5 : index
    %c0_31 = arith.constant 0 : index
    %c0_32 = arith.constant 0 : index
    %62 = vector.load %arg8[%c5, %c0_31, %c0_32] : memref<16x16x128xf32, #tpu.memory_space<vmem>>, vector<1x16x128xf32>
    %63 = vector.shape_cast %62 : vector<1x16x128xf32> to vector<16x128xf32>
    %64 = vector.shape_cast %61 : vector<16x128xf32> to vector<1x16x128xf32>
    tpu.vector_store %arg8[%c5, %c0_31, %c0_32], %64 {strides = array<i32>} : memref<16x16x128xf32, #tpu.memory_space<vmem>>, vector<1x16x128xf32>,
    %65 = vector.broadcast %54 : vector<16x1xf32> to vector<16x128xf32>
    %66 = arith.subf %33, %65 : vector<16x128xf32>
    %c6 = arith.constant 6 : index
    %c0_33 = arith.constant 0 : index
    %c0_34 = arith.constant 0 : index
    %67 = vector.load %arg8[%c6, %c0_33, %c0_34] : memref<16x16x128xf32, #tpu.memory_space<vmem>>, vector<1x16x128xf32>
    %68 = vector.shape_cast %67 : vector<1x16x128xf32> to vector<16x128xf32>
    %69 = vector.shape_cast %66 : vector<16x128xf32> to vector<1x16x128xf32>
    tpu.vector_store %arg8[%c6, %c0_33, %c0_34], %69 {strides = array<i32>} : memref<16x16x128xf32, #tpu.memory_space<vmem>>, vector<1x16x128xf32>,
    %70 = vector.broadcast %52 : vector<16x1xf32> to vector<16x128xf32>
    %71 = arith.subf %28, %70 : vector<16x128xf32>
    %c10 = arith.constant 10 : index
    %c0_35 = arith.constant 0 : index
    %c0_36 = arith.constant 0 : index
    %72 = vector.load %arg8[%c10, %c0_35, %c0_36] : memref<16x16x128xf32, #tpu.memory_space<vmem>>, vector<1x16x128xf32>
    %73 = vector.shape_cast %72 : vector<1x16x128xf32> to vector<16x128xf32>
    %74 = vector.shape_cast %71 : vector<16x128xf32> to vector<1x16x128xf32>
    tpu.vector_store %arg8[%c10, %c0_35, %c0_36], %74 {strides = array<i32>} : memref<16x16x128xf32, #tpu.memory_space<vmem>>, vector<1x16x128xf32>,
    %75 = vector.broadcast %53 : vector<16x1xf32> to vector<16x128xf32>
    %76 = arith.subf %29, %75 : vector<16x128xf32>
    %c11 = arith.constant 11 : index
    %c0_37 = arith.constant 0 : index
    %c0_38 = arith.constant 0 : index
    %77 = vector.load %arg8[%c11, %c0_37, %c0_38] : memref<16x16x128xf32, #tpu.memory_space<vmem>>, vector<1x16x128xf32>
    %78 = vector.shape_cast %77 : vector<1x16x128xf32> to vector<16x128xf32>
    %79 = vector.shape_cast %76 : vector<16x128xf32> to vector<1x16x128xf32>
    tpu.vector_store %arg8[%c11, %c0_37, %c0_38], %79 {strides = array<i32>} : memref<16x16x128xf32, #tpu.memory_space<vmem>>, vector<1x16x128xf32>,
    %80 = vector.broadcast %54 : vector<16x1xf32> to vector<16x128xf32>
    %81 = arith.subf %30, %80 : vector<16x128xf32>
    %c12 = arith.constant 12 : index
    %c0_39 = arith.constant 0 : index
    %c0_40 = arith.constant 0 : index
    %82 = vector.load %arg8[%c12, %c0_39, %c0_40] : memref<16x16x128xf32, #tpu.memory_space<vmem>>, vector<1x16x128xf32>
    %83 = vector.shape_cast %82 : vector<1x16x128xf32> to vector<16x128xf32>
    %84 = vector.shape_cast %81 : vector<16x128xf32> to vector<1x16x128xf32>
    tpu.vector_store %arg8[%c12, %c0_39, %c0_40], %84 {strides = array<i32>} : memref<16x16x128xf32, #tpu.memory_space<vmem>>, vector<1x16x128xf32>,
    %85 = vector.extract_strided_slice %19 {offsets = [0, 64], sizes = [16, 64], strides = [1, 1]} : vector<16x128xbf16> to vector<16x64xbf16>
    %c1_41 = arith.constant 1 : index
    %c0_42 = arith.constant 0 : index
    %c0_43 = arith.constant 0 : index
    %86 = vector.load %arg9[%c1_41, %c0_42, %c0_43] : memref<2x64x768xbf16, #tpu.memory_space<vmem>>, vector<1x64x768xbf16>
    %87 = vector.shape_cast %86 : vector<1x64x768xbf16> to vector<64x768xbf16>
    %cst_44 = arith.constant dense<0.000000e+00> : vector<16x768xf32>
    %88 = tpu.matmul %85, %87, %cst_44 {dimension_numbers = #tpu.dot_dimension_numbers<[1], [0], [0], [1], [0, 0, 1, 1], [], []>} : vector<16x64xbf16>, vector<64x768xbf16>, vector<16x768xf32> -> vector<16x768xf32>
    %c1_45 = arith.constant 1 : index
    %c0_46 = arith.constant 0 : index
    %c0_47 = arith.constant 0 : index
    %89 = vector.load %arg5[%c1_45, %c0_46, %c0_47] : memref<2x1x768xf32, #tpu.memory_space<vmem>>, vector<1x1x768xf32>
    %90 = vector.shape_cast %89 : vector<1x1x768xf32> to vector<1x768xf32>
    %91 = vector.broadcast %90 : vector<1x768xf32> to vector<16x768xf32>
    %92 = arith.addf %88, %91 : vector<16x768xf32>
    %93 = vector.extract_strided_slice %92 {offsets = [0, 0], sizes = [16, 128], strides = [1, 1]} : vector<16x768xf32> to vector<16x128xf32>
    %94 = vector.extract_strided_slice %92 {offsets = [0, 128], sizes = [16, 128], strides = [1, 1]} : vector<16x768xf32> to vector<16x128xf32>
    %95 = vector.extract_strided_slice %92 {offsets = [0, 256], sizes = [16, 128], strides = [1, 1]} : vector<16x768xf32> to vector<16x128xf32>
    %96 = vector.extract_strided_slice %92 {offsets = [0, 384], sizes = [16, 128], strides = [1, 1]} : vector<16x768xf32> to vector<16x128xf32>
    %97 = vector.extract_strided_slice %92 {offsets = [0, 512], sizes = [16, 128], strides = [1, 1]} : vector<16x768xf32> to vector<16x128xf32>
    %98 = vector.extract_strided_slice %92 {offsets = [0, 640], sizes = [16, 128], strides = [1, 1]} : vector<16x768xf32> to vector<16x128xf32>
    %99 = vector.extract_strided_slice %15 {offsets = [0, 122], sizes = [16, 3], strides = [1, 1]} : vector<16x128xf32> to vector<16x3xf32>
    %100 = vector.extract_strided_slice %99 {offsets = [0, 0], sizes = [16, 1], strides = [1, 1]} : vector<16x3xf32> to vector<16x1xf32>
    %101 = vector.extract_strided_slice %99 {offsets = [0, 1], sizes = [16, 1], strides = [1, 1]} : vector<16x3xf32> to vector<16x1xf32>
    %102 = vector.extract_strided_slice %99 {offsets = [0, 2], sizes = [16, 1], strides = [1, 1]} : vector<16x3xf32> to vector<16x1xf32>
    %103 = vector.broadcast %100 : vector<16x1xf32> to vector<16x128xf32>
    %104 = arith.mulf %96, %103 : vector<16x128xf32>
    %105 = vector.broadcast %101 : vector<16x1xf32> to vector<16x128xf32>
    %106 = arith.addf %104, %105 : vector<16x128xf32>
    %c2 = arith.constant 2 : index
    %c0_48 = arith.constant 0 : index
    %c0_49 = arith.constant 0 : index
    %107 = vector.load %arg8[%c2, %c0_48, %c0_49] : memref<16x16x128xf32, #tpu.memory_space<vmem>>, vector<1x16x128xf32>
    %108 = vector.shape_cast %107 : vector<1x16x128xf32> to vector<16x128xf32>
    %109 = vector.shape_cast %106 : vector<16x128xf32> to vector<1x16x128xf32>
    tpu.vector_store %arg8[%c2, %c0_48, %c0_49], %109 {strides = array<i32>} : memref<16x16x128xf32, #tpu.memory_space<vmem>>, vector<1x16x128xf32>,
    %110 = vector.broadcast %100 : vector<16x1xf32> to vector<16x128xf32>
    %111 = arith.mulf %97, %110 : vector<16x128xf32>
    %112 = vector.broadcast %102 : vector<16x1xf32> to vector<16x128xf32>
    %113 = arith.addf %111, %112 : vector<16x128xf32>
    %c3 = arith.constant 3 : index
    %c0_50 = arith.constant 0 : index
    %c0_51 = arith.constant 0 : index
    %114 = vector.load %arg8[%c3, %c0_50, %c0_51] : memref<16x16x128xf32, #tpu.memory_space<vmem>>, vector<1x16x128xf32>
    %115 = vector.shape_cast %114 : vector<1x16x128xf32> to vector<16x128xf32>
    %116 = vector.shape_cast %113 : vector<16x128xf32> to vector<1x16x128xf32>
    tpu.vector_store %arg8[%c3, %c0_50, %c0_51], %116 {strides = array<i32>} : memref<16x16x128xf32, #tpu.memory_space<vmem>>, vector<1x16x128xf32>,
    %117 = vector.extract_strided_slice %96 {offsets = [0, 20], sizes = [16, 1], strides = [1, 1]} : vector<16x128xf32> to vector<16x1xf32>
    %118 = vector.extract_strided_slice %97 {offsets = [0, 20], sizes = [16, 1], strides = [1, 1]} : vector<16x128xf32> to vector<16x1xf32>
    %119 = vector.extract_strided_slice %98 {offsets = [0, 20], sizes = [16, 1], strides = [1, 1]} : vector<16x128xf32> to vector<16x1xf32>
    %120 = vector.broadcast %117 : vector<16x1xf32> to vector<16x128xf32>
    %121 = arith.subf %96, %120 : vector<16x128xf32>
    %c7 = arith.constant 7 : index
    %c0_52 = arith.constant 0 : index
    %c0_53 = arith.constant 0 : index
    %122 = vector.load %arg8[%c7, %c0_52, %c0_53] : memref<16x16x128xf32, #tpu.memory_space<vmem>>, vector<1x16x128xf32>
    %123 = vector.shape_cast %122 : vector<1x16x128xf32> to vector<16x128xf32>
    %124 = vector.shape_cast %121 : vector<16x128xf32> to vector<1x16x128xf32>
    tpu.vector_store %arg8[%c7, %c0_52, %c0_53], %124 {strides = array<i32>} : memref<16x16x128xf32, #tpu.memory_space<vmem>>, vector<1x16x128xf32>,
    %125 = vector.broadcast %118 : vector<16x1xf32> to vector<16x128xf32>
    %126 = arith.subf %97, %125 : vector<16x128xf32>
    %c8 = arith.constant 8 : index
    %c0_54 = arith.constant 0 : index
    %c0_55 = arith.constant 0 : index
    %127 = vector.load %arg8[%c8, %c0_54, %c0_55] : memref<16x16x128xf32, #tpu.memory_space<vmem>>, vector<1x16x128xf32>
    %128 = vector.shape_cast %127 : vector<1x16x128xf32> to vector<16x128xf32>
    %129 = vector.shape_cast %126 : vector<16x128xf32> to vector<1x16x128xf32>
    tpu.vector_store %arg8[%c8, %c0_54, %c0_55], %129 {strides = array<i32>} : memref<16x16x128xf32, #tpu.memory_space<vmem>>, vector<1x16x128xf32>,
    %130 = vector.broadcast %119 : vector<16x1xf32> to vector<16x128xf32>
    %131 = arith.subf %98, %130 : vector<16x128xf32>
    %c9 = arith.constant 9 : index
    %c0_56 = arith.constant 0 : index
    %c0_57 = arith.constant 0 : index
    %132 = vector.load %arg8[%c9, %c0_56, %c0_57] : memref<16x16x128xf32, #tpu.memory_space<vmem>>, vector<1x16x128xf32>
    %133 = vector.shape_cast %132 : vector<1x16x128xf32> to vector<16x128xf32>
    %134 = vector.shape_cast %131 : vector<16x128xf32> to vector<1x16x128xf32>
    tpu.vector_store %arg8[%c9, %c0_56, %c0_57], %134 {strides = array<i32>} : memref<16x16x128xf32, #tpu.memory_space<vmem>>, vector<1x16x128xf32>,
    %135 = vector.broadcast %117 : vector<16x1xf32> to vector<16x128xf32>
    %136 = arith.subf %93, %135 : vector<16x128xf32>
    %c13 = arith.constant 13 : index
    %c0_58 = arith.constant 0 : index
    %c0_59 = arith.constant 0 : index
    %137 = vector.load %arg8[%c13, %c0_58, %c0_59] : memref<16x16x128xf32, #tpu.memory_space<vmem>>, vector<1x16x128xf32>
    %138 = vector.shape_cast %137 : vector<1x16x128xf32> to vector<16x128xf32>
    %139 = vector.shape_cast %136 : vector<16x128xf32> to vector<1x16x128xf32>
    tpu.vector_store %arg8[%c13, %c0_58, %c0_59], %139 {strides = array<i32>} : memref<16x16x128xf32, #tpu.memory_space<vmem>>, vector<1x16x128xf32>,
    %140 = vector.broadcast %118 : vector<16x1xf32> to vector<16x128xf32>
    %141 = arith.subf %94, %140 : vector<16x128xf32>
    %c14 = arith.constant 14 : index
    %c0_60 = arith.constant 0 : index
    %c0_61 = arith.constant 0 : index
    %142 = vector.load %arg8[%c14, %c0_60, %c0_61] : memref<16x16x128xf32, #tpu.memory_space<vmem>>, vector<1x16x128xf32>
    %143 = vector.shape_cast %142 : vector<1x16x128xf32> to vector<16x128xf32>
    %144 = vector.shape_cast %141 : vector<16x128xf32> to vector<1x16x128xf32>
    tpu.vector_store %arg8[%c14, %c0_60, %c0_61], %144 {strides = array<i32>} : memref<16x16x128xf32, #tpu.memory_space<vmem>>, vector<1x16x128xf32>,
    %145 = vector.broadcast %119 : vector<16x1xf32> to vector<16x128xf32>
    %146 = arith.subf %95, %145 : vector<16x128xf32>
    %c15 = arith.constant 15 : index
    %c0_62 = arith.constant 0 : index
    %c0_63 = arith.constant 0 : index
    %147 = vector.load %arg8[%c15, %c0_62, %c0_63] : memref<16x16x128xf32, #tpu.memory_space<vmem>>, vector<1x16x128xf32>
    %148 = vector.shape_cast %147 : vector<1x16x128xf32> to vector<16x128xf32>
    %149 = vector.shape_cast %146 : vector<16x128xf32> to vector<1x16x128xf32>
    tpu.vector_store %arg8[%c15, %c0_62, %c0_63], %149 {strides = array<i32>} : memref<16x16x128xf32, #tpu.memory_space<vmem>>, vector<1x16x128xf32>,
    return
  }
}

</mosaic_0001>

<bundles_post_ra>
// kernel: _forward_core.1
= control target key start
LH: loop header
LB: loop body
LE: loop exit
PB: predicated region body
PF: predicated region fallthrough
CT: control target
= control target key end

     0   :  { %14 = vsyncpa [#allocation5], 0  ;;  %s5596_s0 = inlined_call_operand.vmem [shape: bf16[16,3072], index: 0, kind: input, shape index: {}]   ;;  %s5597_s1 = inlined_call_operand.hbm [shape: bf16[3072,128], index: 1, kind: input, shape index: {}]   ;;  %s5598_s2 = inlined_call_operand.vmem [shape: bf16[128,384], index: 2, kind: input, shape index: {}]   ;;  %s5599_s3 = inlined_call_operand.vmem [shape: f32[1,384], index: 3, kind: input, shape index: {}]   ;;  %s5600_s4 = inlined_call_operand.hbm [shape: bf16[384,128], index: 4, kind: input, shape index: {}]   ;;  %s5601_s5 = inlined_call_operand.vmem [shape: f32[2,1,768], index: 5, kind: input, shape index: {}]   ;;  %s5602_s6 = inlined_call_operand.vmem [shape: bf16[2,64,768], index: 6, kind: input, shape index: {}]   ;;  %s5603_s7 = inlined_call_operand.vmem [shape: f32[2,16,128], index: 7, kind: output, shape index: {0}]   ;;  %s5604_s8 = inlined_call_operand.vmem [shape: f32[16,16,128], index: 8, kind: output, shape index: {1}]  }
   0x1   :  { %15 = vsyncpa [#allocation7], 0  ;;  %s4790_s27 = smov [#allocation4]   ;;  %s4740_s9 = scalar_lea.hbm %s5597_s1, 24576 }
   0x2   :  { %s23_s28 = sshll.u32 %s4790_s27, 4  ;;  %p4741_p0 = scmp.ne.s32.totalorder %s5597_s1, %s4740_s9  ;;  %s24_s28 = int_to_ptr.vmem [resolvable:$true] %s23_s28 }
   0x3   :  { %p4744_p1 = scmp.lt.u32.totalorder %s4740_s9, %s5597_s1 }
   0x5   :  { %p4746_p2 = pnand %p4744_p1, %p4741_p0 }
   0x7   :  { %4749 = shalt.err (!%p4746_p2)
}
   0x8   :  { %s4750_s14 = scalar_lea.vmem %s24_s28, 24576  ;;  %p4755_p4 = scmp.lt.s32.totalorder %s24_s28, %s24_s28 }
   0x9   :  { %p4751_p3 = scmp.ne.s32.totalorder %s24_s28, %s4750_s14  ;;  %p4756_p5 = scmp.lt.s32.totalorder %s4750_s14, %s4750_s14 }
   0xb   :  { %p4757_p6 = por %p4756_p5, %p4755_p4 }
   0xd   :  { %p4758_p7 = pnand %p4757_p6, %p4751_p3 }
   0xf   :  { %4761 = shalt.err (!%p4758_p7)
}
  0x10   :  { %s4791_s15 = smov 64   ;;  %s4792_s16 = smov 4  }
  0x11   :  { %29 = dma.hbm_to_vmem [thread:$0]  %s5597_s1, 24576, %s24_s28, [#allocation5], %s4791_s15, %s4791_s15, %s4792_s16  }
  0x12   :  { %s4793_s19 = smov [#allocation6]   ;;  %s4762_s23 = scalar_lea.hbm %s5600_s4, 3072 }
  0x13   :  { %s39_s20 = sshll.u32 %s4793_s19, 4  ;;  %p4763_p8 = scmp.ne.s32.totalorder %s5600_s4, %s4762_s23  ;;  %s40_s20 = int_to_ptr.vmem [resolvable:$true] %s39_s20 }
  0x14   :  { %p4766_p9 = scmp.lt.u32.totalorder %s4762_s23, %s5600_s4 }
  0x16   :  { %p4768_p10 = pnand %p4766_p9, %p4763_p8 }
  0x18   :  { %4771 = shalt.err (!%p4768_p10)
}
  0x19   :  { %s4772_s29 = scalar_lea.vmem %s40_s20, 3072  ;;  %p4777_p12 = scmp.lt.s32.totalorder %s40_s20, %s40_s20 }
  0x1a   :  { %p4773_p11 = scmp.ne.s32.totalorder %s40_s20, %s4772_s29  ;;  %p4778_p13 = scmp.lt.s32.totalorder %s4772_s29, %s4772_s29 }
  0x1c   :  { %p4779_p0 = por %p4778_p13, %p4777_p12 }
  0x1e   :  { %p4780_p1 = pnand %p4779_p0, %p4773_p11 }
  0x20   :  { %4783 = shalt.err (!%p4780_p1)
}
  0x21   :  { %45 = dma.hbm_to_vmem [thread:$0]  %s5600_s4, 3072, %s40_s20, [#allocation7], %s4791_s15, %s4791_s15, %s4792_s16  }
  0x22   :  { %4784 = dma.done.wait [#allocation5], 24576  }
  0x23   :  { %4785 = vsyncadd [#allocation5], 4294942720 }
  0x24   :  { %4786 = dma.done.wait [#allocation7], 3072  }
  0x25   :  { %4787 = vsyncadd [#allocation7], 4294964224  ;;  %v72_v0 = vld [vmem:[%s5602_s6] sm:$0xf]  ;;  %v74_v1 = vld [vmem:[%s5602_s6 + $0x18] sm:$0xf] }
  0x26   :  { %v76_v2 = vld [vmem:[%s5602_s6 + $0x4] sm:$0xf]  ;;  %73 = vst [vmem:[#allocation2] sm:$0xf] %v72_v0  ;;  %75 = vst [vmem:[#allocation2 + $0x4] sm:$0xf] %v74_v1 }
  0x27   :  { %77 = vst [vmem:[#allocation2 + $0x8] sm:$0xf] %v76_v2  ;;  %v78_v3 = vld [vmem:[%s5602_s6 + $0x1c] sm:$0xf]  ;;  %v80_v4 = vld [vmem:[%s5602_s6 + $0x8] sm:$0xf] }
  0x28   :  { %v82_v5 = vld [vmem:[%s5602_s6 + $0x20] sm:$0xf]  ;;  %79 = vst [vmem:[#allocation2 + $0xc] sm:$0xf] %v78_v3  ;;  %81 = vst [vmem:[#allocation2 + $0x10] sm:$0xf] %v80_v4 }
  0x29   :  { %83 = vst [vmem:[#allocation2 + $0x14] sm:$0xf] %v82_v5  ;;  %v84_v6 = vld [vmem:[%s5602_s6 + $0xc] sm:$0xf]  ;;  %v86_v7 = vld [vmem:[%s5602_s6 + $0x24] sm:$0xf] }
  0x2a   :  { %v88_v8 = vld [vmem:[%s5602_s6 + $0x10] sm:$0xf]  ;;  %85 = vst [vmem:[#allocation2 + $0x18] sm:$0xf] %v84_v6  ;;  %87 = vst [vmem:[#allocation2 + $0x1c] sm:$0xf] %v86_v7 }
  0x2b   :  { %89 = vst [vmem:[#allocation2 + $0x20] sm:$0xf] %v88_v8  ;;  %v90_v9 = vld [vmem:[%s5602_s6 + $0x28] sm:$0xf]  ;;  %v92_v10 = vld [vmem:[%s5602_s6 + $0x14] sm:$0xf] }
  0x2c   :  { %v94_v11 = vld [vmem:[%s5602_s6 + $0x2c] sm:$0xff]   ;;  %91 = vst [vmem:[#allocation2 + $0x24] sm:$0xf] %v90_v9  ;;  %93 = vst [vmem:[#allocation2 + $0x28] sm:$0xf] %v92_v10  ;;  %v118_v22 = vld [vmem:[%s5602_s6 + $0x5c] sm:$0xff]  }
  0x2d   :  { %95 = vst [vmem:[#allocation2 + $0x2c] sm:$0xff] %v94_v11   ;;  %v98_v12 = vld [vmem:[%s5602_s6 + $0x48] sm:$0xf]  ;;  %v100_v13 = vld [vmem:[%s5602_s6 + $0x34] sm:$0xf]  ;;  %119 = vst [vmem:[#allocation2 + $0x5c] sm:$0xff] %v118_v22  }
  0x2e   :  { %v102_v14 = vld [vmem:[%s5602_s6 + $0x4c] sm:$0xf]  ;;  %99 = vst [vmem:[#allocation2 + $0x34] sm:$0xf] %v98_v12  ;;  %101 = vst [vmem:[#allocation2 + $0x38] sm:$0xf] %v100_v13 }
  0x2f   :  { %103 = vst [vmem:[#allocation2 + $0x3c] sm:$0xf] %v102_v14  ;;  %v104_v15 = vld [vmem:[%s5602_s6 + $0x38] sm:$0xf]  ;;  %v106_v16 = vld [vmem:[%s5602_s6 + $0x50] sm:$0xf] }
  0x30   :  { %v108_v17 = vld [vmem:[%s5602_s6 + $0x3c] sm:$0xf]  ;;  %105 = vst [vmem:[#allocation2 + $0x40] sm:$0xf] %v104_v15  ;;  %107 = vst [vmem:[#allocation2 + $0x44] sm:$0xf] %v106_v16 }
  0x31   :  { %109 = vst [vmem:[#allocation2 + $0x48] sm:$0xf] %v108_v17  ;;  %v110_v18 = vld [vmem:[%s5602_s6 + $0x54] sm:$0xf]  ;;  %v112_v19 = vld [vmem:[%s5602_s6 + $0x40] sm:$0xf] }
  0x32   :  { %v114_v20 = vld [vmem:[%s5602_s6 + $0x58] sm:$0xf]  ;;  %111 = vst [vmem:[#allocation2 + $0x4c] sm:$0xf] %v110_v18  ;;  %113 = vst [vmem:[#allocation2 + $0x50] sm:$0xf] %v112_v19 }
  0x33   :  { %115 = vst [vmem:[#allocation2 + $0x54] sm:$0xf] %v114_v20  ;;  %v116_v21 = vld [vmem:[%s5602_s6 + $0x44] sm:$0xf]  ;;  %v122_v23 = vld [vmem:[%s5602_s6 + $0x78] sm:$0xf] }
  0x34   :  { %117 = vst [vmem:[#allocation2 + $0x58] sm:$0xf] %v116_v21  ;;  %123 = vst [vmem:[#allocation2 + $0x64] sm:$0xf] %v122_v23  ;;  %v124_v24 = vld [vmem:[%s5602_s6 + $0x64] sm:$0xf] }
  0x35   :  { %v126_v25 = vld [vmem:[%s5602_s6 + $0x7c] sm:$0xf]  ;;  %v128_v26 = vld [vmem:[%s5602_s6 + $0x68] sm:$0xf]  ;;  %125 = vst [vmem:[#allocation2 + $0x68] sm:$0xf] %v124_v24 }
  0x36   :  { %127 = vst [vmem:[#allocation2 + $0x6c] sm:$0xf] %v126_v25  ;;  %129 = vst [vmem:[#allocation2 + $0x70] sm:$0xf] %v128_v26  ;;  %v130_v27 = vld [vmem:[%s5602_s6 + $0x80] sm:$0xf] }
  0x37   :  { %v132_v28 = vld [vmem:[%s5602_s6 + $0x6c] sm:$0xf]  ;;  %v134_v29 = vld [vmem:[%s5602_s6 + $0x84] sm:$0xf]  ;;  %131 = vst [vmem:[#allocation2 + $0x74] sm:$0xf] %v130_v27 }
  0x38   :  { %133 = vst [vmem:[#allocation2 + $0x78] sm:$0xf] %v132_v28  ;;  %135 = vst [vmem:[#allocation2 + $0x7c] sm:$0xf] %v134_v29  ;;  %v136_v30 = vld [vmem:[%s5602_s6 + $0x70] sm:$0xf] }
  0x39   :  { %v138_v31 = vld [vmem:[%s5602_s6 + $0x88] sm:$0xf]  ;;  %v140_v32 = vld [vmem:[%s5602_s6 + $0x74] sm:$0xf]  ;;  %137 = vst [vmem:[#allocation2 + $0x80] sm:$0xf] %v136_v30 }
  0x3a   :  { %139 = vst [vmem:[#allocation2 + $0x84] sm:$0xf] %v138_v31  ;;  %141 = vst [vmem:[#allocation2 + $0x88] sm:$0xf] %v140_v32  ;;  %v142_v33 = vld [vmem:[%s5602_s6 + $0x8c] sm:$0xff]   ;;  %v166_v44 = vld [vmem:[%s5602_s6 + $0xbc] sm:$0xff]  }
  0x3b   :  { %v146_v34 = vld [vmem:[%s5602_s6 + $0xa8] sm:$0xf]  ;;  %v148_v35 = vld [vmem:[%s5602_s6 + $0x94] sm:$0xf]  ;;  %143 = vst [vmem:[#allocation2 + $0x8c] sm:$0xff] %v142_v33   ;;  %167 = vst [vmem:[#allocation2 + $0xbc] sm:$0xff] %v166_v44  }
  0x3c   :  { %147 = vst [vmem:[#allocation2 + $0x94] sm:$0xf] %v146_v34  ;;  %149 = vst [vmem:[#allocation2 + $0x98] sm:$0xf] %v148_v35  ;;  %v150_v36 = vld [vmem:[%s5602_s6 + $0xac] sm:$0xf] }
  0x3d   :  { %v152_v37 = vld [vmem:[%s5602_s6 + $0x98] sm:$0xf]  ;;  %v154_v38 = vld [vmem:[%s5602_s6 + $0xb0] sm:$0xf]  ;;  %151 = vst [vmem:[#allocation2 + $0x9c] sm:$0xf] %v150_v36 }
  0x3e   :  { %153 = vst [vmem:[#allocation2 + $0xa0] sm:$0xf] %v152_v37  ;;  %155 = vst [vmem:[#allocation2 + $0xa4] sm:$0xf] %v154_v38  ;;  %v156_v39 = vld [vmem:[%s5602_s6 + $0x9c] sm:$0xf] }
  0x3f   :  { %v158_v40 = vld [vmem:[%s5602_s6 + $0xb4] sm:$0xf]  ;;  %v160_v41 = vld [vmem:[%s5602_s6 + $0xa0] sm:$0xf]  ;;  %157 = vst [vmem:[#allocation2 + $0xa8] sm:$0xf] %v156_v39 }
  0x40   :  { %159 = vst [vmem:[#allocation2 + $0xac] sm:$0xf] %v158_v40  ;;  %161 = vst [vmem:[#allocation2 + $0xb0] sm:$0xf] %v160_v41  ;;  %v162_v42 = vld [vmem:[%s5602_s6 + $0xb8] sm:$0xf] }
  0x41   :  { %v164_v43 = vld [vmem:[%s5602_s6 + $0xa4] sm:$0xf]  ;;  %163 = vst [vmem:[#allocation2 + $0xb4] sm:$0xf] %v162_v42  ;;  %v170_v45 = vld [vmem:[%s5602_s6 + $0xd8] sm:$0xf] }
  0x42   :  { %165 = vst [vmem:[#allocation2 + $0xb8] sm:$0xf] %v164_v43  ;;  %v172_v46 = vld [vmem:[%s5602_s6 + $0xc4] sm:$0xf]  ;;  %v174_v47 = vld [vmem:[%s5602_s6 + $0xdc] sm:$0xf] }
  0x43   :  { %171 = vst [vmem:[#allocation2 + $0xc4] sm:$0xf] %v170_v45  ;;  %173 = vst [vmem:[#allocation2 + $0xc8] sm:$0xf] %v172_v46  ;;  %v176_v48 = vld [vmem:[%s5602_s6 + $0xc8] sm:$0xf] }
  0x44   :  { %175 = vst [vmem:[#allocation2 + $0xcc] sm:$0xf] %v174_v47  ;;  %v178_v49 = vld [vmem:[%s5602_s6 + $0xe0] sm:$0xf]  ;;  %v180_v50 = vld [vmem:[%s5602_s6 + $0xcc] sm:$0xf] }
  0x45   :  { %177 = vst [vmem:[#allocation2 + $0xd0] sm:$0xf] %v176_v48  ;;  %179 = vst [vmem:[#allocation2 + $0xd4] sm:$0xf] %v178_v49  ;;  %v182_v51 = vld [vmem:[%s5602_s6 + $0xe4] sm:$0xf] }
  0x46   :  { %181 = vst [vmem:[#allocation2 + $0xd8] sm:$0xf] %v180_v50  ;;  %v184_v52 = vld [vmem:[%s5602_s6 + $0xd0] sm:$0xf]  ;;  %v186_v53 = vld [vmem:[%s5602_s6 + $0xe8] sm:$0xf] }
  0x47   :  { %183 = vst [vmem:[#allocation2 + $0xdc] sm:$0xf] %v182_v51  ;;  %185 = vst [vmem:[#allocation2 + $0xe0] sm:$0xf] %v184_v52  ;;  %v188_v54 = vld [vmem:[%s5602_s6 + $0xd4] sm:$0xf] }
  0x48   :  { %187 = vst [vmem:[#allocation2 + $0xe4] sm:$0xf] %v186_v53  ;;  %v190_v55 = vld [vmem:[%s5602_s6 + $0xec] sm:$0xff]   ;;  %v194_v56 = vld [vmem:[%s5602_s6 + $0x108] sm:$0xf]  ;;  %v214_v2 = vld [vmem:[%s5602_s6 + $0x11c] sm:$0xff]  }
  0x49   :  { %189 = vst [vmem:[#allocation2 + $0xe8] sm:$0xf] %v188_v54  ;;  %191 = vst [vmem:[#allocation2 + $0xec] sm:$0xff] %v190_v55   ;;  %v196_v57 = vld [vmem:[%s5602_s6 + $0xf4] sm:$0xf]  ;;  %v238_v13 = vld [vmem:[%s5602_s6 + $0x14c] sm:$0xff]  }
  0x4a   :  { %195 = vst [vmem:[#allocation2 + $0xf4] sm:$0xf] %v194_v56  ;;  %v198_v58 = vld [vmem:[%s5602_s6 + $0x10c] sm:$0xf]  ;;  %v200_v59 = vld [vmem:[%s5602_s6 + $0xf8] sm:$0xf] }
  0x4b   :  { %197 = vst [vmem:[#allocation2 + $0xf8] sm:$0xf] %v196_v57  ;;  %199 = vst [vmem:[#allocation2 + $0xfc] sm:$0xf] %v198_v58  ;;  %v202_v60 = vld [vmem:[%s5602_s6 + $0x110] sm:$0xf] }
  0x4c   :  { %201 = vst [vmem:[#allocation2 + $0x100] sm:$0xf] %v200_v59  ;;  %v204_v61 = vld [vmem:[%s5602_s6 + $0xfc] sm:$0xf]  ;;  %v206_v62 = vld [vmem:[%s5602_s6 + $0x114] sm:$0xf] }
  0x4d   :  { %203 = vst [vmem:[#allocation2 + $0x104] sm:$0xf] %v202_v60  ;;  %205 = vst [vmem:[#allocation2 + $0x108] sm:$0xf] %v204_v61  ;;  %v208_v63 = vld [vmem:[%s5602_s6 + $0x100] sm:$0xf] }
  0x4e   :  { %207 = vst [vmem:[#allocation2 + $0x10c] sm:$0xf] %v206_v62  ;;  %v210_v0 = vld [vmem:[%s5602_s6 + $0x118] sm:$0xf]  ;;  %v212_v1 = vld [vmem:[%s5602_s6 + $0x104] sm:$0xf] }
  0x4f   :  { %209 = vst [vmem:[#allocation2 + $0x110] sm:$0xf] %v208_v63  ;;  %211 = vst [vmem:[#allocation2 + $0x114] sm:$0xf] %v210_v0  ;;  %v218_v3 = vld [vmem:[%s5602_s6 + $0x138] sm:$0xf] }
  0x50   :  { %213 = vst [vmem:[#allocation2 + $0x118] sm:$0xf] %v212_v1  ;;  %v220_v4 = vld [vmem:[%s5602_s6 + $0x124] sm:$0xf]  ;;  %215 = vst [vmem:[#allocation2 + $0x11c] sm:$0xff] %v214_v2  }
  0x51   :  { %219 = vst [vmem:[#allocation2 + $0x124] sm:$0xf] %v218_v3  ;;  %221 = vst [vmem:[#allocation2 + $0x128] sm:$0xf] %v220_v4  ;;  %v222_v5 = vld [vmem:[%s5602_s6 + $0x13c] sm:$0xf] }
  0x52   :  { %v224_v6 = vld [vmem:[%s5602_s6 + $0x128] sm:$0xf]  ;;  %v226_v7 = vld [vmem:[%s5602_s6 + $0x140] sm:$0xf]  ;;  %223 = vst [vmem:[#allocation2 + $0x12c] sm:$0xf] %v222_v5 }
  0x53   :  { %225 = vst [vmem:[#allocation2 + $0x130] sm:$0xf] %v224_v6  ;;  %227 = vst [vmem:[#allocation2 + $0x134] sm:$0xf] %v226_v7  ;;  %v228_v8 = vld [vmem:[%s5602_s6 + $0x12c] sm:$0xf] }
  0x54   :  { %v230_v9 = vld [vmem:[%s5602_s6 + $0x144] sm:$0xf]  ;;  %v232_v10 = vld [vmem:[%s5602_s6 + $0x130] sm:$0xf]  ;;  %229 = vst [vmem:[#allocation2 + $0x138] sm:$0xf] %v228_v8 }
  0x55   :  { %231 = vst [vmem:[#allocation2 + $0x13c] sm:$0xf] %v230_v9  ;;  %233 = vst [vmem:[#allocation2 + $0x140] sm:$0xf] %v232_v10  ;;  %v234_v11 = vld [vmem:[%s5602_s6 + $0x148] sm:$0xf] }
  0x56   :  { %v236_v12 = vld [vmem:[%s5602_s6 + $0x134] sm:$0xf]  ;;  %235 = vst [vmem:[#allocation2 + $0x144] sm:$0xf] %v234_v11  ;;  %239 = vst [vmem:[#allocation2 + $0x14c] sm:$0xff] %v238_v13  }
  0x57   :  { %237 = vst [vmem:[#allocation2 + $0x148] sm:$0xf] %v236_v12  ;;  %v242_v14 = vld [vmem:[%s5602_s6 + $0x168] sm:$0xf]  ;;  %v244_v15 = vld [vmem:[%s5602_s6 + $0x154] sm:$0xf] }
  0x58   :  { %v246_v16 = vld [vmem:[%s5602_s6 + $0x16c] sm:$0xf]  ;;  %243 = vst [vmem:[#allocation2 + $0x154] sm:$0xf] %v242_v14  ;;  %245 = vst [vmem:[#allocation2 + $0x158] sm:$0xf] %v244_v15 }
  0x59   :  { %247 = vst [vmem:[#allocation2 + $0x15c] sm:$0xf] %v246_v16  ;;  %v248_v17 = vld [vmem:[%s5602_s6 + $0x158] sm:$0xf]  ;;  %v250_v18 = vld [vmem:[%s5602_s6 + $0x170] sm:$0xf] }
  0x5a   :  { %v252_v19 = vld [vmem:[%s5602_s6 + $0x15c] sm:$0xf]  ;;  %249 = vst [vmem:[#allocation2 + $0x160] sm:$0xf] %v248_v17  ;;  %251 = vst [vmem:[#allocation2 + $0x164] sm:$0xf] %v250_v18 }
  0x5b   :  { %253 = vst [vmem:[#allocation2 + $0x168] sm:$0xf] %v252_v19  ;;  %v254_v20 = vld [vmem:[%s5602_s6 + $0x174] sm:$0xf]  ;;  %v256_v21 = vld [vmem:[%s5602_s6 + $0x160] sm:$0xf] }
  0x5c   :  { %v258_v22 = vld [vmem:[%s5602_s6 + $0x178] sm:$0xf]  ;;  %255 = vst [vmem:[#allocation2 + $0x16c] sm:$0xf] %v254_v20  ;;  %257 = vst [vmem:[#allocation2 + $0x170] sm:$0xf] %v256_v21 }
  0x5d   :  { %259 = vst [vmem:[#allocation2 + $0x174] sm:$0xf] %v258_v22  ;;  %v260_v23 = vld [vmem:[%s5602_s6 + $0x164] sm:$0xf]  ;;  %v262_v24 = vld [vmem:[%s5602_s6 + $0x17c] sm:$0xf] }
  0x5e   :  { %261 = vst [vmem:[#allocation2 + $0x178] sm:$0xf] %v260_v23  ;;  %263 = vst [vmem:[#allocation2 + $0x17c] sm:$0xf] %v262_v24 }
  0x5f   :  { %486 = vsyncadd [#allocation3], 6144  ;;  %v4480_v25 = vld [vmem:[#allocation4 + $0x40] sm:$0xff]   ;;  %v4484_v29 = vld [vmem:[#allocation4 + $0x48] sm:$0xff]   ;;  %vm4796_vm0 = vmmov 0  }
  0x60   :  { %v4481_v26 = vld [vmem:[#allocation4 + $0xc0] sm:$0xff]   ;;  %4122 = vmatprep.subr.bf16.mxu0 %v4480_v25  ;;  %v4485_v30 = vld [vmem:[#allocation4 + $0xc8] sm:$0xff]   ;;  %v4488_v33 = vld [vmem:[#allocation4 + $0x50] sm:$0xff]  }
  0x61   :  { %v4482_v27 = vld [vmem:[#allocation4] sm:$0xff]   ;;  %4144 = vmatprep.subr.bf16.mxu1 %v4481_v26  ;;  %v4486_v31 = vld [vmem:[#allocation4 + $0x8] sm:$0xff]   ;;  %v4489_v34 = vld [vmem:[#allocation4 + $0xd0] sm:$0xff]  }
  0x62   :  { %v4483_v28 = vld [vmem:[#allocation4 + $0x80] sm:$0xff]   ;;  %4123 = vmatpush3.bf16.msra.mxu0 %v4482_v27  ;;  %v4487_v32 = vld [vmem:[#allocation4 + $0x88] sm:$0xff]   ;;  %v4490_v35 = vld [vmem:[#allocation4 + $0x10] sm:$0xff]  }
  0x63   :  { %4145 = vmatpush3.bf16.msra.mxu1 %v4483_v28  ;;  %4124 = vmatprep.subr.bf16.mxu0 %v4484_v29  ;;  %v4491_v36 = vld [vmem:[#allocation4 + $0x90] sm:$0xff]   ;;  %v4492_v37 = vld [vmem:[#allocation4 + $0x58] sm:$0xff]   ;;  %v4496_v41 = vld [vmem:[#allocation4 + $0x60] sm:$0xff]  }
  0x64   :  { %4146 = vmatprep.subr.bf16.mxu1 %v4485_v30  ;;  %v4493_v38 = vld [vmem:[#allocation4 + $0xd8] sm:$0xff]   ;;  %v4497_v42 = vld [vmem:[#allocation4 + $0xe0] sm:$0xff]   ;;  %v4500_v45 = vld [vmem:[#allocation4 + $0x68] sm:$0xff]  }
  0x65   :  { %v4494_v39 = vld [vmem:[#allocation4 + $0x18] sm:$0xff]   ;;  %v4498_v43 = vld [vmem:[#allocation4 + $0x20] sm:$0xff]   ;;  %v4501_v46 = vld [vmem:[#allocation4 + $0xe8] sm:$0xff]  }
  0x66   :  { %4125 = vmatpush3.bf16.msra.mxu0 %v4486_v31  ;;  %v4495_v40 = vld [vmem:[#allocation4 + $0x98] sm:$0xff]   ;;  %v4499_v44 = vld [vmem:[#allocation4 + $0xa0] sm:$0xff]   ;;  %v4502_v47 = vld [vmem:[#allocation4 + $0x28] sm:$0xff]  }
  0x67   :  { %4147 = vmatpush3.bf16.msra.mxu1 %v4487_v32  ;;  %4126 = vmatprep.subr.bf16.mxu0 %v4488_v33  ;;  %v4503_v48 = vld [vmem:[#allocation4 + $0xa8] sm:$0xff]   ;;  %v4504_v49 = vld [vmem:[#allocation4 + $0x70] sm:$0xff]   ;;  %v4508_v53 = vld [vmem:[#allocation4 + $0x78] sm:$0xff]  }
  0x68   :  { %4148 = vmatprep.subr.bf16.mxu1 %v4489_v34  ;;  %v4505_v50 = vld [vmem:[#allocation4 + $0xf0] sm:$0xff]   ;;  %v4509_v54 = vld [vmem:[#allocation4 + $0xf8] sm:$0xff]   ;;  %v487_v57 = vld [vmem:[%s5596_s0] sm:$0xff] }
  0x69   :  { %v4506_v51 = vld [vmem:[#allocation4 + $0x30] sm:$0xff]   ;;  %v4510_v55 = vld [vmem:[#allocation4 + $0x38] sm:$0xff]   ;;  %v499_v58 = vld [vmem:[%s5596_s0 + $0x60] sm:$0xff] }
  0x6a   :  { %4127 = vmatpush3.bf16.msra.mxu0 %v4490_v35  ;;  %v4507_v52 = vld [vmem:[#allocation4 + $0xb0] sm:$0xff]   ;;  %v4511_v56 = vld [vmem:[#allocation4 + $0xb8] sm:$0xff]   ;;  %v3818_v59 = vcombine.low %v487_v57, %v499_v58  ;;  %v3819_v60 = vcombine.high %v487_v57, %v499_v58  ;;  %v488_v61 = vld [vmem:[%s5596_s0 + $0x8] sm:$0xff] }
  0x6b   :  { %4149 = vmatpush3.bf16.msra.mxu1 %v4491_v36  ;;  %4128 = vmatprep.subr.bf16.mxu0 %v4492_v37  ;;  %v500_v62 = vld [vmem:[%s5596_s0 + $0x68] sm:$0xff]  ;;  %v4512_v1 = vld [vmem:[#allocation4 + $0x140] sm:$0xff]   ;;  %v4520_v9 = vld [vmem:[#allocation4 + $0x150] sm:$0xff]  }
  0x6c   :  { %4150 = vmatprep.subr.bf16.mxu1 %v4493_v38  ;;  %v3820_v63 = vcombine.low %v488_v61, %v500_v62  ;;  %v3821_v0 = vcombine.high %v488_v61, %v500_v62  ;;  %2199 = vmatprep.mubr.bf16.mxu0 %v3819_v60  ;;  %v4513_v2 = vld [vmem:[#allocation4 + $0x1c0] sm:$0xff]   ;;  %v4516_v5 = vld [vmem:[#allocation4 + $0x148] sm:$0xff]   ;;  %v4521_v10 = vld [vmem:[#allocation4 + $0x1d0] sm:$0xff]  }
  0x6d   :  { %v4514_v3 = vld [vmem:[#allocation4 + $0x100] sm:$0xff]   ;;  %v4517_v6 = vld [vmem:[#allocation4 + $0x1c8] sm:$0xff]   ;;  %v4522_v11 = vld [vmem:[#allocation4 + $0x110] sm:$0xff]  }
  0x6e   :  { %4129 = vmatpush3.bf16.msra.mxu0 %v4494_v39  ;;  %2240 = vmatprep.mubr.bf16.mxu1 %v3821_v0  ;;  %v4515_v4 = vld [vmem:[#allocation4 + $0x180] sm:$0xff]   ;;  %v4518_v7 = vld [vmem:[#allocation4 + $0x108] sm:$0xff]   ;;  %v4523_v12 = vld [vmem:[#allocation4 + $0x190] sm:$0xff]  }
  0x6f   :  { %4151 = vmatpush3.bf16.msra.mxu1 %v4495_v40  ;;  %4130 = vmatprep.subr.bf16.mxu0 %v4496_v41  ;;  %v4519_v8 = vld [vmem:[#allocation4 + $0x188] sm:$0xff]   ;;  %v4524_v13 = vld [vmem:[#allocation4 + $0x158] sm:$0xff]   ;;  %v4528_v17 = vld [vmem:[#allocation4 + $0x160] sm:$0xff]  }
  0x70   :  { %4152 = vmatprep.subr.bf16.mxu1 %v4497_v42  ;;  %v4525_v14 = vld [vmem:[#allocation4 + $0x1d8] sm:$0xff]   ;;  %v4529_v18 = vld [vmem:[#allocation4 + $0x1e0] sm:$0xff]   ;;  %v4532_v21 = vld [vmem:[#allocation4 + $0x168] sm:$0xff]  }
  0x71   :  { %v4526_v15 = vld [vmem:[#allocation4 + $0x118] sm:$0xff]   ;;  %v4530_v19 = vld [vmem:[#allocation4 + $0x120] sm:$0xff]   ;;  %v4533_v22 = vld [vmem:[#allocation4 + $0x1e8] sm:$0xff]  }
  0x72   :  { %4131 = vmatpush3.bf16.msra.mxu0 %v4498_v43  ;;  %v4527_v16 = vld [vmem:[#allocation4 + $0x198] sm:$0xff]   ;;  %v4531_v20 = vld [vmem:[#allocation4 + $0x1a0] sm:$0xff]   ;;  %v4534_v23 = vld [vmem:[#allocation4 + $0x128] sm:$0xff]  }
  0x73   :  { %4153 = vmatpush3.bf16.msra.mxu1 %v4499_v44  ;;  %4132 = vmatprep.subr.bf16.mxu0 %v4500_v45  ;;  %v4535_v24 = vld [vmem:[#allocation4 + $0x1a8] sm:$0xff]   ;;  %v4536_v25 = vld [vmem:[#allocation4 + $0x170] sm:$0xff]   ;;  %v4540_v29 = vld [vmem:[#allocation4 + $0x178] sm:$0xff]  }
  0x74   :  { %4154 = vmatprep.subr.bf16.mxu1 %v4501_v46  ;;  %v4537_v26 = vld [vmem:[#allocation4 + $0x1f0] sm:$0xff]   ;;  %v4541_v30 = vld [vmem:[#allocation4 + $0x1f8] sm:$0xff]   ;;  %v4544_v41 = vld [vmem:[#allocation4 + $0x240] sm:$0xff]  }
  0x75   :  { %v4538_v27 = vld [vmem:[#allocation4 + $0x130] sm:$0xff]   ;;  %v4542_v31 = vld [vmem:[#allocation4 + $0x138] sm:$0xff]   ;;  %v4545_v42 = vld [vmem:[#allocation4 + $0x2c0] sm:$0xff]  }
  0x76   :  { %4133 = vmatpush3.bf16.msra.mxu0 %v4502_v47  ;;  %v4539_v28 = vld [vmem:[#allocation4 + $0x1b0] sm:$0xff]   ;;  %v4543_v32 = vld [vmem:[#allocation4 + $0x1b8] sm:$0xff]   ;;  %v4546_v43 = vld [vmem:[#allocation4 + $0x200] sm:$0xff]  }
  0x77   :  { %4155 = vmatpush3.bf16.msra.mxu1 %v4503_v48  ;;  %4134 = vmatprep.subr.bf16.mxu0 %v4504_v49  ;;  %v489_v33 = vld [vmem:[%s5596_s0 + $0x10] sm:$0xff]  ;;  %v490_v35 = vld [vmem:[%s5596_s0 + $0x18] sm:$0xff]  ;;  %v4547_v44 = vld [vmem:[#allocation4 + $0x280] sm:$0xff]  }
  0x78   :  { %4156 = vmatprep.subr.bf16.mxu1 %v4505_v50  ;;  %v501_v34 = vld [vmem:[%s5596_s0 + $0x70] sm:$0xff]  ;;  %v502_v36 = vld [vmem:[%s5596_s0 + $0x78] sm:$0xff]  ;;  %v4548_v45 = vld [vmem:[#allocation4 + $0x248] sm:$0xff]  }
  0x79   :  { %v3822_v37 = vcombine.low %v489_v33, %v501_v34  ;;  %v3823_v38 = vcombine.high %v489_v33, %v501_v34  ;;  %v3824_v39 = vcombine.low %v490_v35, %v502_v36  ;;  %v3825_v40 = vcombine.high %v490_v35, %v502_v36  ;;  %v4549_v46 = vld [vmem:[#allocation4 + $0x2c8] sm:$0xff]   ;;  %v4552_v49 = vld [vmem:[#allocation4 + $0x250] sm:$0xff]   ;;  %v4560_v57 = vld [vmem:[#allocation4 + $0x260] sm:$0xff]  }
  0x7a   :  { %4135 = vmatpush3.bf16.msra.mxu0 %v4506_v51  ;;  %v4550_v47 = vld [vmem:[#allocation4 + $0x208] sm:$0xff]   ;;  %v4553_v50 = vld [vmem:[#allocation4 + $0x2d0] sm:$0xff]   ;;  %v4561_v58 = vld [vmem:[#allocation4 + $0x2e0] sm:$0xff]  }
  0x7b   :  { %4157 = vmatpush3.bf16.msra.mxu1 %v4507_v52  ;;  %4136 = vmatprep.subr.bf16.mxu0 %v4508_v53  ;;  %v4551_v48 = vld [vmem:[#allocation4 + $0x288] sm:$0xff]   ;;  %v4554_v51 = vld [vmem:[#allocation4 + $0x210] sm:$0xff]   ;;  %v4556_v53 = vld [vmem:[#allocation4 + $0x258] sm:$0xff]  }
  0x7c   :  { %4158 = vmatprep.subr.bf16.mxu1 %v4509_v54  ;;  %v4555_v52 = vld [vmem:[#allocation4 + $0x290] sm:$0xff]   ;;  %v4557_v54 = vld [vmem:[#allocation4 + $0x2d8] sm:$0xff]   ;;  %v4563_v60 = vld [vmem:[#allocation4 + $0x2a0] sm:$0xff]  }
  0x7d   :  { %v4564_v61 = vld [vmem:[#allocation4 + $0x268] sm:$0xff]   ;;  %v4592_v33 = vld [vmem:[#allocation4 + $0x360] sm:$0xff]  }
  0x7e   :  { %4137 = vmatpush3.bf16.msra.mxu0 %v4510_v55  ;;  %v4558_v55 = vld [vmem:[#allocation4 + $0x218] sm:$0xff]   ;;  %v4565_v62 = vld [vmem:[#allocation4 + $0x2e8] sm:$0xff]   ;;  %v4593_v34 = vld [vmem:[#allocation4 + $0x3e0] sm:$0xff]  }
  0x7f   :  { %4159 = vmatpush3.bf16.msra.mxu1 %v4511_v56  ;;  %4166 = vmatprep.subr.bf16.mxu0 %v4512_v1  ;;  %v4559_v56 = vld [vmem:[#allocation4 + $0x298] sm:$0xff]   ;;  %v4567_v0 = vld [vmem:[#allocation4 + $0x2a8] sm:$0xff]   ;;  %v4568_v1 = vld [vmem:[#allocation4 + $0x270] sm:$0xff]  }
  0x80   :  { %4188 = vmatprep.subr.bf16.mxu1 %v4513_v2  ;;  %v4569_v2 = vld [vmem:[#allocation4 + $0x2f0] sm:$0xff]   ;;  %v4594_v35 = vld [vmem:[#allocation4 + $0x320] sm:$0xff]  }
  0x81   :  { %2200 = vmatmul.mubr.bf16.vlgmr.msra.gmra.mrb[0].mxu0 %v3818_v59  ;;  %v4562_v59 = vld [vmem:[#allocation4 + $0x220] sm:$0xff]  }
  0x82   :  { %2241 = vmatmul.mubr.bf16.vlgmr.msra.gmra.mrb[0].mxu1 %v3820_v63  ;;  %4167 = vmatpush3.bf16.msra.mxu0 %v4514_v3  ;;  %v4566_v63 = vld [vmem:[#allocation4 + $0x228] sm:$0xff]   ;;  %v4570_v3 = vld [vmem:[#allocation4 + $0x230] sm:$0xff]   ;;  %v4595_v36 = vld [vmem:[#allocation4 + $0x3a0] sm:$0xff]  }
  0x83   :  { %4189 = vmatpush3.bf16.msra.mxu1 %v4515_v4  ;;  %4168 = vmatprep.subr.bf16.mxu0 %v4516_v5  ;;  %v4571_v4 = vld [vmem:[#allocation4 + $0x2b0] sm:$0xff]   ;;  %v4572_v5 = vld [vmem:[#allocation4 + $0x278] sm:$0xff]  }
  0x84   :  { %4190 = vmatprep.subr.bf16.mxu1 %v4517_v6  ;;  %2281 = vmatprep.mubr.bf16.mxu0 %v3823_v38  ;;  %v4573_v6 = vld [vmem:[#allocation4 + $0x2f8] sm:$0xff]   ;;  %v4597_v38 = vld [vmem:[#allocation4 + $0x3e8] sm:$0xff]  }
  0x85   :  { %2322 = vmatprep.mubr.bf16.mxu1 %v3825_v40  ;;  %v4599_v40 = vld [vmem:[#allocation4 + $0x3a8] sm:$0xff]  }
  0x86   :  { %4169 = vmatpush3.bf16.msra.mxu0 %v4518_v7  ;;  %v4574_v7 = vld [vmem:[#allocation4 + $0x238] sm:$0xff]  }
  0x87   :  { %4191 = vmatpush3.bf16.msra.mxu1 %v4519_v8  ;;  %4170 = vmatprep.subr.bf16.mxu0 %v4520_v9  ;;  %v4575_v8 = vld [vmem:[#allocation4 + $0x2b8] sm:$0xff]   ;;  %v491_v9 = vld [vmem:[%s5596_s0 + $0x20] sm:$0xff] }
  0x88   :  { %4192 = vmatprep.subr.bf16.mxu1 %v4521_v10  ;;  %v503_v10 = vld [vmem:[%s5596_s0 + $0x80] sm:$0xff] }
  0x8a   :  { %4171 = vmatpush3.bf16.msra.mxu0 %v4522_v11  ;;  %v492_v11 = vld [vmem:[%s5596_s0 + $0x28] sm:$0xff] }
  0x8b   :  { %4193 = vmatpush3.bf16.msra.mxu1 %v4523_v12  ;;  %4172 = vmatprep.subr.bf16.mxu0 %v4524_v13  ;;  %v3826_v12 = vcombine.low %v491_v9, %v503_v10  ;;  %v3827_v13 = vcombine.high %v491_v9, %v503_v10  ;;  %v4624_v9 = vld [vmem:[#allocation4 + $0x460] sm:$0xff]  }
  0x8c   :  { %4194 = vmatprep.subr.bf16.mxu1 %v4525_v14  ;;  %v504_v14 = vld [vmem:[%s5596_s0 + $0x88] sm:$0xff]  ;;  %v4625_v10 = vld [vmem:[#allocation4 + $0x4e0] sm:$0xff]  }
  0x8e   :  { %4173 = vmatpush3.bf16.msra.mxu0 %v4526_v15  ;;  %v3828_v15 = vcombine.low %v492_v11, %v504_v14 }
  0x8f   :  { %4195 = vmatpush3.bf16.msra.mxu1 %v4527_v16  ;;  %4174 = vmatprep.subr.bf16.mxu0 %v4528_v17  ;;  %v3829_v16 = vcombine.high %v492_v11, %v504_v14  ;;  %v4576_v17 = vld [vmem:[#allocation4 + $0x340] sm:$0xff]   ;;  %v4629_v14 = vld [vmem:[#allocation4 + $0x4e8] sm:$0xff]  }
  0x90   :  { %4196 = vmatprep.subr.bf16.mxu1 %v4529_v18  ;;  %v4577_v18 = vld [vmem:[#allocation4 + $0x3c0] sm:$0xff]  }
  0x91   :  { %v4626_v11 = vld [vmem:[#allocation4 + $0x420] sm:$0xff]  }
  0x92   :  { %4175 = vmatpush3.bf16.msra.mxu0 %v4530_v19  ;;  %v4578_v19 = vld [vmem:[#allocation4 + $0x300] sm:$0xff]  }
  0x93   :  { %4197 = vmatpush3.bf16.msra.mxu1 %v4531_v20  ;;  %4176 = vmatprep.subr.bf16.mxu0 %v4532_v21  ;;  %v4579_v20 = vld [vmem:[#allocation4 + $0x380] sm:$0xff]   ;;  %v4580_v21 = vld [vmem:[#allocation4 + $0x348] sm:$0xff]  }
  0x94   :  { %4198 = vmatprep.subr.bf16.mxu1 %v4533_v22  ;;  %v4581_v22 = vld [vmem:[#allocation4 + $0x3c8] sm:$0xff]  }
  0x96   :  { %4177 = vmatpush3.bf16.msra.mxu0 %v4534_v23  ;;  %v4582_v23 = vld [vmem:[#allocation4 + $0x308] sm:$0xff]  }
  0x97   :  { %4199 = vmatpush3.bf16.msra.mxu1 %v4535_v24  ;;  %4178 = vmatprep.subr.bf16.mxu0 %v4536_v25  ;;  %v4583_v24 = vld [vmem:[#allocation4 + $0x388] sm:$0xff]   ;;  %v4584_v25 = vld [vmem:[#allocation4 + $0x350] sm:$0xff]  }
  0x98   :  { %4200 = vmatprep.subr.bf16.mxu1 %v4537_v26  ;;  %v4585_v26 = vld [vmem:[#allocation4 + $0x3d0] sm:$0xff]  }
  0x9a   :  { %4179 = vmatpush3.bf16.msra.mxu0 %v4538_v27  ;;  %v4586_v27 = vld [vmem:[#allocation4 + $0x310] sm:$0xff]  }
  0x9b   :  { %4201 = vmatpush3.bf16.msra.mxu1 %v4539_v28  ;;  %4180 = vmatprep.subr.bf16.mxu0 %v4540_v29  ;;  %v4587_v28 = vld [vmem:[#allocation4 + $0x390] sm:$0xff]   ;;  %v4588_v29 = vld [vmem:[#allocation4 + $0x358] sm:$0xff]  }
  0x9c   :  { %4202 = vmatprep.subr.bf16.mxu1 %v4541_v30  ;;  %v4589_v30 = vld [vmem:[#allocation4 + $0x3d8] sm:$0xff]  }
  0x9e   :  { %4181 = vmatpush3.bf16.msra.mxu0 %v4542_v31  ;;  %v4590_v31 = vld [vmem:[#allocation4 + $0x318] sm:$0xff]  }
  0x9f   :  { %4203 = vmatpush3.bf16.msra.mxu1 %v4543_v32  ;;  %4210 = vmatprep.subr.bf16.mxu0 %v4544_v41  ;;  %v4591_v32 = vld [vmem:[#allocation4 + $0x398] sm:$0xff]   ;;  %v4600_v41 = vld [vmem:[#allocation4 + $0x370] sm:$0xff]  }
  0xa0   :  { %4232 = vmatprep.subr.bf16.mxu1 %v4545_v42  ;;  %v4601_v42 = vld [vmem:[#allocation4 + $0x3f0] sm:$0xff]  }
  0xa1   :  { %2282 = vmatmul.mubr.bf16.vlgmr.msra.gmra.mrb[4].mxu0 %v3822_v37  ;;  %v4596_v37 = vld [vmem:[#allocation4 + $0x368] sm:$0xff]  }
  0xa2   :  { %2323 = vmatmul.mubr.bf16.vlgmr.msra.gmra.mrb[4].mxu1 %v3824_v39  ;;  %4211 = vmatpush3.bf16.msra.mxu0 %v4546_v43  ;;  %v4598_v39 = vld [vmem:[#allocation4 + $0x328] sm:$0xff]   ;;  %v4602_v43 = vld [vmem:[#allocation4 + $0x330] sm:$0xff]  }
  0xa3   :  { %4233 = vmatpush3.bf16.msra.mxu1 %v4547_v44  ;;  %4212 = vmatprep.subr.bf16.mxu0 %v4548_v45  ;;  %v4603_v44 = vld [vmem:[#allocation4 + $0x3b0] sm:$0xff]   ;;  %v4604_v45 = vld [vmem:[#allocation4 + $0x378] sm:$0xff]  }
  0xa4   :  { %4234 = vmatprep.subr.bf16.mxu1 %v4549_v46  ;;  %2363 = vmatprep.mubr.bf16.mxu0 %v3827_v13  ;;  %v4605_v46 = vld [vmem:[#allocation4 + $0x3f8] sm:$0xff]   ;;  %v4628_v13 = vld [vmem:[#allocation4 + $0x468] sm:$0xff]  }
  0xa5   :  { %2404 = vmatprep.mubr.bf16.mxu1 %v3829_v16  ;;  %v4631_v16 = vld [vmem:[#allocation4 + $0x4a8] sm:$0xff]  }
  0xa6   :  { %4213 = vmatpush3.bf16.msra.mxu0 %v4550_v47  ;;  %v4606_v47 = vld [vmem:[#allocation4 + $0x338] sm:$0xff]  }
  0xa7   :  { %4235 = vmatpush3.bf16.msra.mxu1 %v4551_v48  ;;  %4214 = vmatprep.subr.bf16.mxu0 %v4552_v49  ;;  %v4607_v48 = vld [vmem:[#allocation4 + $0x3b8] sm:$0xff]   ;;  %v493_v49 = vld [vmem:[%s5596_s0 + $0x30] sm:$0xff] }
  0xa8   :  { %4236 = vmatprep.subr.bf16.mxu1 %v4553_v50  ;;  %v505_v50 = vld [vmem:[%s5596_s0 + $0x90] sm:$0xff] }
  0xaa   :  { %4215 = vmatpush3.bf16.msra.mxu0 %v4554_v51  ;;  %v3830_v51 = vcombine.low %v493_v49, %v505_v50 }
  0xab   :  { %4237 = vmatpush3.bf16.msra.mxu1 %v4555_v52  ;;  %4216 = vmatprep.subr.bf16.mxu0 %v4556_v53  ;;  %v3831_v52 = vcombine.high %v493_v49, %v505_v50  ;;  %v494_v53 = vld [vmem:[%s5596_s0 + $0x38] sm:$0xff]  ;;  %v4656_v49 = vld [vmem:[#allocation4 + $0x560] sm:$0xff]  }
  0xac   :  { %4238 = vmatprep.subr.bf16.mxu1 %v4557_v54  ;;  %v506_v54 = vld [vmem:[%s5596_s0 + $0x98] sm:$0xff]  ;;  %v4657_v50 = vld [vmem:[#allocation4 + $0x5e0] sm:$0xff]  }
  0xae   :  { %4217 = vmatpush3.bf16.msra.mxu0 %v4558_v55  ;;  %v3832_v55 = vcombine.low %v494_v53, %v506_v54 }
  0xaf   :  { %4239 = vmatpush3.bf16.msra.mxu1 %v4559_v56  ;;  %4218 = vmatprep.subr.bf16.mxu0 %v4560_v57  ;;  %v3833_v56 = vcombine.high %v494_v53, %v506_v54  ;;  %v4608_v57 = vld [vmem:[#allocation4 + $0x440] sm:$0xff]   ;;  %v4660_v53 = vld [vmem:[#allocation4 + $0x568] sm:$0xff]  }
  0xb0   :  { %4240 = vmatprep.subr.bf16.mxu1 %v4561_v58  ;;  %v4609_v58 = vld [vmem:[#allocation4 + $0x4c0] sm:$0xff]   ;;  %v4661_v54 = vld [vmem:[#allocation4 + $0x5e8] sm:$0xff]  }
  0xb2   :  { %4219 = vmatpush3.bf16.msra.mxu0 %v4562_v59  ;;  %v4610_v59 = vld [vmem:[#allocation4 + $0x400] sm:$0xff]  }
  0xb3   :  { %4241 = vmatpush3.bf16.msra.mxu1 %v4563_v60  ;;  %4220 = vmatprep.subr.bf16.mxu0 %v4564_v61  ;;  %v4611_v60 = vld [vmem:[#allocation4 + $0x480] sm:$0xff]   ;;  %v4612_v61 = vld [vmem:[#allocation4 + $0x448] sm:$0xff]  }
  0xb4   :  { %4242 = vmatprep.subr.bf16.mxu1 %v4565_v62  ;;  %v4613_v62 = vld [vmem:[#allocation4 + $0x4c8] sm:$0xff]  }
  0xb6   :  { %4221 = vmatpush3.bf16.msra.mxu0 %v4566_v63  ;;  %v4614_v63 = vld [vmem:[#allocation4 + $0x408] sm:$0xff]  }
  0xb7   :  { %4243 = vmatpush3.bf16.msra.mxu1 %v4567_v0  ;;  %4222 = vmatprep.subr.bf16.mxu0 %v4568_v1  ;;  %v4615_v0 = vld [vmem:[#allocation4 + $0x488] sm:$0xff]   ;;  %v4616_v1 = vld [vmem:[#allocation4 + $0x450] sm:$0xff]  }
  0xb8   :  { %4244 = vmatprep.subr.bf16.mxu1 %v4569_v2  ;;  %v4617_v2 = vld [vmem:[#allocation4 + $0x4d0] sm:$0xff]  }
  0xba   :  { %4223 = vmatpush3.bf16.msra.mxu0 %v4570_v3  ;;  %v4618_v3 = vld [vmem:[#allocation4 + $0x410] sm:$0xff]  }
  0xbb   :  { %4245 = vmatpush3.bf16.msra.mxu1 %v4571_v4  ;;  %4224 = vmatprep.subr.bf16.mxu0 %v4572_v5  ;;  %v4619_v4 = vld [vmem:[#allocation4 + $0x490] sm:$0xff]   ;;  %v4620_v5 = vld [vmem:[#allocation4 + $0x458] sm:$0xff]  }
  0xbc   :  { %4246 = vmatprep.subr.bf16.mxu1 %v4573_v6  ;;  %v4621_v6 = vld [vmem:[#allocation4 + $0x4d8] sm:$0xff]  }
  0xbe   :  { %4225 = vmatpush3.bf16.msra.mxu0 %v4574_v7  ;;  %v4622_v7 = vld [vmem:[#allocation4 + $0x418] sm:$0xff]  }
  0xbf   :  { %4247 = vmatpush3.bf16.msra.mxu1 %v4575_v8  ;;  %4254 = vmatprep.subr.bf16.mxu0 %v4576_v17  ;;  %v4623_v8 = vld [vmem:[#allocation4 + $0x498] sm:$0xff]   ;;  %v4632_v17 = vld [vmem:[#allocation4 + $0x470] sm:$0xff]  }
  0xc0   :  { %4276 = vmatprep.subr.bf16.mxu1 %v4577_v18  ;;  %v4633_v18 = vld [vmem:[#allocation4 + $0x4f0] sm:$0xff]  }
  0xc1   :  { %2364 = vmatmul.mubr.bf16.vlgmr.msra.gmra.mrb[8].mxu0 %v3826_v12  ;;  %v4627_v12 = vld [vmem:[#allocation4 + $0x4a0] sm:$0xff]  }
  0xc2   :  { %2405 = vmatmul.mubr.bf16.vlgmr.msra.gmra.mrb[8].mxu1 %v3828_v15  ;;  %4255 = vmatpush3.bf16.msra.mxu0 %v4578_v19  ;;  %v4630_v15 = vld [vmem:[#allocation4 + $0x428] sm:$0xff]   ;;  %v4634_v19 = vld [vmem:[#allocation4 + $0x430] sm:$0xff]  }
  0xc3   :  { %4277 = vmatpush3.bf16.msra.mxu1 %v4579_v20  ;;  %4256 = vmatprep.subr.bf16.mxu0 %v4580_v21  ;;  %v4635_v20 = vld [vmem:[#allocation4 + $0x4b0] sm:$0xff]   ;;  %v4636_v21 = vld [vmem:[#allocation4 + $0x478] sm:$0xff]  }
  0xc4   :  { %4278 = vmatprep.subr.bf16.mxu1 %v4581_v22  ;;  %2445 = vmatprep.mubr.bf16.mxu0 %v3831_v52  ;;  %v4637_v22 = vld [vmem:[#allocation4 + $0x4f8] sm:$0xff]   ;;  %v4659_v52 = vld [vmem:[#allocation4 + $0x5a0] sm:$0xff]  }
  0xc5   :  { %2486 = vmatprep.mubr.bf16.mxu1 %v3833_v56  ;;  %v4663_v56 = vld [vmem:[#allocation4 + $0x5a8] sm:$0xff]  }
  0xc6   :  { %4257 = vmatpush3.bf16.msra.mxu0 %v4582_v23  ;;  %v4638_v23 = vld [vmem:[#allocation4 + $0x438] sm:$0xff]  }
  0xc7   :  { %4279 = vmatpush3.bf16.msra.mxu1 %v4583_v24  ;;  %4258 = vmatprep.subr.bf16.mxu0 %v4584_v25  ;;  %v4639_v24 = vld [vmem:[#allocation4 + $0x4b8] sm:$0xff]   ;;  %v495_v25 = vld [vmem:[%s5596_s0 + $0x40] sm:$0xff] }
  0xc8   :  { %4280 = vmatprep.subr.bf16.mxu1 %v4585_v26  ;;  %v507_v26 = vld [vmem:[%s5596_s0 + $0xa0] sm:$0xff] }
  0xca   :  { %4259 = vmatpush3.bf16.msra.mxu0 %v4586_v27  ;;  %v496_v27 = vld [vmem:[%s5596_s0 + $0x48] sm:$0xff] }
  0xcb   :  { %4281 = vmatpush3.bf16.msra.mxu1 %v4587_v28  ;;  %4260 = vmatprep.subr.bf16.mxu0 %v4588_v29  ;;  %v508_v28 = vld [vmem:[%s5596_s0 + $0xa8] sm:$0xff]  ;;  %v3834_v29 = vcombine.low %v495_v25, %v507_v26 }
  0xcc   :  { %4282 = vmatprep.subr.bf16.mxu1 %v4589_v30  ;;  %v3835_v30 = vcombine.high %v495_v25, %v507_v26  ;;  %v4794_v25 = vmov 0.0   ;;  %v4675_v26 = vld [vmem:[%s5598_s2 + $0x8] ss:$12 sps:$4 sm:$0xff]  }
  0xce   :  { %4261 = vmatpush3.bf16.msra.mxu0 %v4590_v31  ;;  %v3836_v31 = vcombine.low %v496_v27, %v508_v28 }
  0xcf   :  { %4283 = vmatpush3.bf16.msra.mxu1 %v4591_v32  ;;  %4262 = vmatprep.subr.bf16.mxu0 %v4592_v33  ;;  %v3837_v32 = vcombine.high %v496_v27, %v508_v28  ;;  %v4640_v33 = vld [vmem:[#allocation4 + $0x540] sm:$0xff]   ;;  %v4678_v27 = vld [vmem:[%s5598_s2 + $0x1c] ss:$12 sps:$4 sm:$0xff]  }
  0xd0   :  { %4284 = vmatprep.subr.bf16.mxu1 %v4593_v34  ;;  %v4641_v34 = vld [vmem:[#allocation4 + $0x5c0] sm:$0xff]  }
  0xd1   :  { %v4676_v28 = vld [vmem:[%s5598_s2 + $0x18] ss:$12 sps:$4 sm:$0xff]  }
  0xd2   :  { %4263 = vmatpush3.bf16.msra.mxu0 %v4594_v35  ;;  %v4642_v35 = vld [vmem:[#allocation4 + $0x500] sm:$0xff]  }
  0xd3   :  { %4285 = vmatpush3.bf16.msra.mxu1 %v4595_v36  ;;  %4264 = vmatprep.subr.bf16.mxu0 %v4596_v37  ;;  %v4643_v36 = vld [vmem:[#allocation4 + $0x580] sm:$0xff]   ;;  %v4644_v37 = vld [vmem:[#allocation4 + $0x548] sm:$0xff]  }
  0xd4   :  { %4286 = vmatprep.subr.bf16.mxu1 %v4597_v38  ;;  %v4645_v38 = vld [vmem:[#allocation4 + $0x5c8] sm:$0xff]  }
  0xd6   :  { %4265 = vmatpush3.bf16.msra.mxu0 %v4598_v39  ;;  %v4646_v39 = vld [vmem:[#allocation4 + $0x508] sm:$0xff]  }
  0xd7   :  { %4287 = vmatpush3.bf16.msra.mxu1 %v4599_v40  ;;  %4266 = vmatprep.subr.bf16.mxu0 %v4600_v41  ;;  %v4647_v40 = vld [vmem:[#allocation4 + $0x588] sm:$0xff]   ;;  %v4648_v41 = vld [vmem:[#allocation4 + $0x550] sm:$0xff]  }
  0xd8   :  { %4288 = vmatprep.subr.bf16.mxu1 %v4601_v42  ;;  %v4649_v42 = vld [vmem:[#allocation4 + $0x5d0] sm:$0xff]  }
  0xda   :  { %4267 = vmatpush3.bf16.msra.mxu0 %v4602_v43  ;;  %v4650_v43 = vld [vmem:[#allocation4 + $0x510] sm:$0xff]  }
  0xdb   :  { %4289 = vmatpush3.bf16.msra.mxu1 %v4603_v44  ;;  %4268 = vmatprep.subr.bf16.mxu0 %v4604_v45  ;;  %v4651_v44 = vld [vmem:[#allocation4 + $0x590] sm:$0xff]   ;;  %v4652_v45 = vld [vmem:[#allocation4 + $0x558] sm:$0xff]  }
  0xdc   :  { %4290 = vmatprep.subr.bf16.mxu1 %v4605_v46  ;;  %v4653_v46 = vld [vmem:[#allocation4 + $0x5d8] sm:$0xff]  }
  0xde   :  { %4269 = vmatpush3.bf16.msra.mxu0 %v4606_v47  ;;  %v4654_v47 = vld [vmem:[#allocation4 + $0x518] sm:$0xff]  }
  0xdf   :  { %4291 = vmatpush3.bf16.msra.mxu1 %v4607_v48  ;;  %4298 = vmatprep.subr.bf16.mxu0 %v4608_v57  ;;  %v4655_v48 = vld [vmem:[#allocation4 + $0x598] sm:$0xff]   ;;  %v4664_v57 = vld [vmem:[#allocation4 + $0x570] sm:$0xff]  }
  0xe0   :  { %4320 = vmatprep.subr.bf16.mxu1 %v4609_v58  ;;  %v4665_v58 = vld [vmem:[#allocation4 + $0x5f0] sm:$0xff]  }
  0xe1   :  { %2446 = vmatmul.mubr.bf16.vlgmr.msra.gmra.mrb[12].mxu0 %v3830_v51  ;;  %v4658_v51 = vld [vmem:[#allocation4 + $0x520] sm:$0xff]  }
  0xe2   :  { %2487 = vmatmul.mubr.bf16.vlgmr.msra.gmra.mrb[12].mxu1 %v3832_v55  ;;  %4299 = vmatpush3.bf16.msra.mxu0 %v4610_v59  ;;  %v4662_v55 = vld [vmem:[#allocation4 + $0x528] sm:$0xff]   ;;  %v4666_v59 = vld [vmem:[#allocation4 + $0x530] sm:$0xff]  }
  0xe3   :  { %4321 = vmatpush3.bf16.msra.mxu1 %v4611_v60  ;;  %4300 = vmatprep.subr.bf16.mxu0 %v4612_v61  ;;  %v4667_v60 = vld [vmem:[#allocation4 + $0x5b0] sm:$0xff]   ;;  %v4668_v61 = vld [vmem:[#allocation4 + $0x578] sm:$0xff]  }
  0xe4   :  { %4322 = vmatprep.subr.bf16.mxu1 %v4613_v62  ;;  %2527 = vmatprep.mubr.bf16.mxu0 %v3835_v30  ;;  %v4669_v62 = vld [vmem:[#allocation4 + $0x5f8] sm:$0xff]   ;;  %v4682_v30 = vld [vmem:[%s5598_s2 + $0x34] ss:$12 sps:$4 sm:$0xff]  }
  0xe5   :  { %2568 = vmatprep.mubr.bf16.mxu1 %v3837_v32  ;;  %v4683_v32 = vld [vmem:[%s5598_s2 + $0x38] ss:$12 sps:$4 sm:$0xff]  }
  0xe6   :  { %4301 = vmatpush3.bf16.msra.mxu0 %v4614_v63  ;;  %v4670_v63 = vld [vmem:[#allocation4 + $0x538] sm:$0xff]  }
  0xe7   :  { %4323 = vmatpush3.bf16.msra.mxu1 %v4615_v0  ;;  %4302 = vmatprep.subr.bf16.mxu0 %v4616_v1  ;;  %v4671_v0 = vld [vmem:[#allocation4 + $0x5b8] sm:$0xff]   ;;  %v497_v1 = vld [vmem:[%s5596_s0 + $0x50] sm:$0xff] }
  0xe8   :  { %4324 = vmatprep.subr.bf16.mxu1 %v4617_v2  ;;  %v509_v2 = vld [vmem:[%s5596_s0 + $0xb0] sm:$0xff] }
  0xea   :  { %4303 = vmatpush3.bf16.msra.mxu0 %v4618_v3  ;;  %v498_v3 = vld [vmem:[%s5596_s0 + $0x58] sm:$0xff] }
  0xeb   :  { %4325 = vmatpush3.bf16.msra.mxu1 %v4619_v4  ;;  %4304 = vmatprep.subr.bf16.mxu0 %v4620_v5  ;;  %v3838_v4 = vcombine.low %v497_v1, %v509_v2  ;;  %v3839_v5 = vcombine.high %v497_v1, %v509_v2  ;;  %v4705_v1 = vld [vmem:[#allocation6 + $0x40] sm:$0xff]  }
  0xec   :  { %4326 = vmatprep.subr.bf16.mxu1 %v4621_v6  ;;  %v510_v6 = vld [vmem:[%s5596_s0 + $0xb8] sm:$0xff] }
  0xee   :  { %4305 = vmatpush3.bf16.msra.mxu0 %v4622_v7  ;;  %v3840_v7 = vcombine.low %v498_v3, %v510_v6 }
  0xef   :  { %4327 = vmatpush3.bf16.msra.mxu1 %v4623_v8  ;;  %4306 = vmatprep.subr.bf16.mxu0 %v4624_v9  ;;  %v3841_v8 = vcombine.high %v498_v3, %v510_v6 }
  0xf0   :  { %4328 = vmatprep.subr.bf16.mxu1 %v4625_v10 }
  0xf2   :  { %4307 = vmatpush3.bf16.msra.mxu0 %v4626_v11 }
  0xf3   :  { %4329 = vmatpush3.bf16.msra.mxu1 %v4627_v12  ;;  %4308 = vmatprep.subr.bf16.mxu0 %v4628_v13 }
  0xf4   :  { %4330 = vmatprep.subr.bf16.mxu1 %v4629_v14 }
  0xf6   :  { %4309 = vmatpush3.bf16.msra.mxu0 %v4630_v15 }
  0xf7   :  { %4331 = vmatpush3.bf16.msra.mxu1 %v4631_v16  ;;  %4310 = vmatprep.subr.bf16.mxu0 %v4632_v17 }
  0xf8   :  { %4332 = vmatprep.subr.bf16.mxu1 %v4633_v18 }
  0xfa   :  { %4311 = vmatpush3.bf16.msra.mxu0 %v4634_v19 }
  0xfb   :  { %4333 = vmatpush3.bf16.msra.mxu1 %v4635_v20  ;;  %4312 = vmatprep.subr.bf16.mxu0 %v4636_v21 }
  0xfc   :  { %4334 = vmatprep.subr.bf16.mxu1 %v4637_v22 }
  0xfe   :  { %4313 = vmatpush3.bf16.msra.mxu0 %v4638_v23  ;;  %v4672_v23 = vld [vmem:[%s5598_s2] ss:$12 sps:$4 sm:$0xff]  }
  0xff   :  { %4335 = vmatpush3.bf16.msra.mxu1 %v4639_v24  ;;  %4342 = vmatprep.subr.bf16.mxu0 %v4640_v33  ;;  %v4674_v24 = vld [vmem:[%s5598_s2 + $0x4] ss:$12 sps:$4 sm:$0xff]   ;;  %v4686_v33 = vld [vmem:[%s5598_s2 + $0x4c] ss:$12 sps:$4 sm:$0xff]  }
 0x100   :  { %4364 = vmatprep.subr.bf16.mxu1 %v4641_v34  ;;  %v4684_v34 = vld [vmem:[%s5598_s2 + $0x48] ss:$12 sps:$4 sm:$0xff]  }
 0x101   :  { %2528 = vmatmul.mubr.bf16.vlgmr.msra.gmra.mrb[16].mxu0 %v3834_v29  ;;  %v4679_v29 = vld [vmem:[%s5598_s2 + $0x20] ss:$12 sps:$4 sm:$0xff]  }
 0x102   :  { %2569 = vmatmul.mubr.bf16.vlgmr.msra.gmra.mrb[16].mxu1 %v3836_v31  ;;  %4343 = vmatpush3.bf16.msra.mxu0 %v4642_v35  ;;  %v4680_v31 = vld [vmem:[%s5598_s2 + $0x30] ss:$12 sps:$4 sm:$0xff]  }
 0x103   :  { %4365 = vmatpush3.bf16.msra.mxu1 %v4643_v36  ;;  %4344 = vmatprep.subr.bf16.mxu0 %v4644_v37  ;;  %v4687_v35 = vld [vmem:[%s5598_s2 + $0x50] ss:$12 sps:$4 sm:$0xff]   ;;  %v4688_v37 = vld [vmem:[%s5598_s2 + $0x60] ss:$12 sps:$4 sm:$0xff]  }
 0x104   :  { %4366 = vmatprep.subr.bf16.mxu1 %v4645_v38  ;;  %2609 = vmatprep.mubr.bf16.mxu0 %v3839_v5  ;;  %v4690_v36 = vld [vmem:[%s5598_s2 + $0x64] ss:$12 sps:$4 sm:$0xff]   ;;  %v4691_v38 = vld [vmem:[%s5598_s2 + $0x68] ss:$12 sps:$4 sm:$0xff]  }
 0x105   :  { %2650 = vmatprep.mubr.bf16.mxu1 %v3841_v8 }
 0x106   :  { %4345 = vmatpush3.bf16.msra.mxu0 %v4646_v39 }
 0x107   :  { %4367 = vmatpush3.bf16.msra.mxu1 %v4647_v40  ;;  %4346 = vmatprep.subr.bf16.mxu0 %v4648_v41 }
 0x108   :  { %4368 = vmatprep.subr.bf16.mxu1 %v4649_v42 }
 0x10a   :  { %4347 = vmatpush3.bf16.msra.mxu0 %v4650_v43 }
 0x10b   :  { %4369 = vmatpush3.bf16.msra.mxu1 %v4651_v44  ;;  %4348 = vmatprep.subr.bf16.mxu0 %v4652_v45 }
 0x10c   :  { %4370 = vmatprep.subr.bf16.mxu1 %v4653_v46 }
 0x10e   :  { %4349 = vmatpush3.bf16.msra.mxu0 %v4654_v47 }
 0x10f   :  { %4371 = vmatpush3.bf16.msra.mxu1 %v4655_v48  ;;  %4350 = vmatprep.subr.bf16.mxu0 %v4656_v49 }
 0x110   :  { %4372 = vmatprep.subr.bf16.mxu1 %v4657_v50 }
 0x112   :  { %4351 = vmatpush3.bf16.msra.mxu0 %v4658_v51 }
 0x113   :  { %4373 = vmatpush3.bf16.msra.mxu1 %v4659_v52  ;;  %4352 = vmatprep.subr.bf16.mxu0 %v4660_v53  ;;  %v4694_v52 = vld [vmem:[%s5598_s2 + $0x7c] ss:$12 sps:$4 sm:$0xff]   ;;  %v4692_v53 = vld [vmem:[%s5598_s2 + $0x78] ss:$12 sps:$4 sm:$0xff]  }
 0x114   :  { %4374 = vmatprep.subr.bf16.mxu1 %v4661_v54  ;;  %v4695_v54 = vld [vmem:[%s5598_s2 + $0x80] ss:$12 sps:$4 sm:$0xff]  }
 0x116   :  { %4353 = vmatpush3.bf16.msra.mxu0 %v4662_v55 }
 0x117   :  { %4375 = vmatpush3.bf16.msra.mxu1 %v4663_v56  ;;  %4354 = vmatprep.subr.bf16.mxu0 %v4664_v57 }
 0x118   :  { %4376 = vmatprep.subr.bf16.mxu1 %v4665_v58  ;;  %v4698_v58 = vld [vmem:[%s5598_s2 + $0x94] ss:$12 sps:$4 sm:$0xff]  }
 0x11a   :  { %4355 = vmatpush3.bf16.msra.mxu0 %v4666_v59  ;;  %v4696_v59 = vld [vmem:[%s5598_s2 + $0x90] ss:$12 sps:$4 sm:$0xff]  }
 0x11b   :  { %4377 = vmatpush3.bf16.msra.mxu1 %v4667_v60  ;;  %4356 = vmatprep.subr.bf16.mxu0 %v4668_v61  ;;  %v4699_v60 = vld [vmem:[%s5598_s2 + $0x98] ss:$12 sps:$4 sm:$0xff]  }
 0x11c   :  { %4378 = vmatprep.subr.bf16.mxu1 %v4669_v62  ;;  %v4702_v61 = vld [vmem:[%s5598_s2 + $0xac] ss:$12 sps:$4 sm:$0xff]   ;;  %v4700_v62 = vld [vmem:[%s5598_s2 + $0xa8] ss:$12 sps:$4 sm:$0xff]  }
 0x11e   :  { %4357 = vmatpush3.bf16.msra.mxu0 %v4670_v63  ;;  %v4703_v63 = vld [vmem:[%s5598_s2 + $0xb0] ss:$12 sps:$4 sm:$0xff]  }
 0x11f   :  { %4379 = vmatpush3.bf16.msra.mxu1 %v4671_v0  ;;  %2837 = vmatprep.subr.bf16.mxu0 %v4674_v24  ;;  %v4795_v0 = vmov 0  }
 0x120   :  { %4426 = vmatprep.subr.bf16.mxu1 %v4794_v25 }
 0x121   :  { %2610 = vmatmul.mubr.bf16.vlgmr.msra.gmra.mrb[20].mxu0 %v3838_v4 }
 0x122   :  { %2651 = vmatmul.mubr.bf16.vlgmr.msra.gmra.mrb[20].mxu1 %v3840_v7  ;;  %2838 = vmatpush1.bf16.msra.mxu0 %v4672_v23 }
 0x123   :  { %4427 = vmatpush3.bf16.msra.mxu1 %v4675_v26  ;;  %2839 = vmatprep.subr.bf16.mxu0 %v4678_v27 }
 0x124   :  { %4428 = vmatprep.subr.bf16.mxu1 %v4794_v25  ;;  %2869 = vmatprep.mubr.bf16.mxu0 %v4795_v0 }
 0x125   :  { %4442 = vmatprep.mubr.msk.bf16.mxu1 %vm4796_vm0, %v4794_v25 }
 0x126   :  { %2840 = vmatpush1.bf16.msra.mxu0 %v4676_v28 }
 0x127   :  { %4429 = vmatpush3.bf16.msra.mxu1 %v4679_v29  ;;  %2841 = vmatprep.subr.bf16.mxu0 %v4682_v30 }
 0x128   :  { %4430 = vmatprep.subr.bf16.mxu1 %v4794_v25 }
 0x12a   :  { %2842 = vmatpush1.bf16.msra.mxu0 %v4680_v31 }
 0x12b   :  { %4431 = vmatpush3.bf16.msra.mxu1 %v4683_v32  ;;  %2843 = vmatprep.subr.bf16.mxu0 %v4686_v33 }
 0x12c   :  { %4432 = vmatprep.subr.bf16.mxu1 %v4794_v25 }
 0x12e   :  { %2844 = vmatpush1.bf16.msra.mxu0 %v4684_v34 }
 0x12f   :  { %4433 = vmatpush3.bf16.msra.mxu1 %v4687_v35  ;;  %2845 = vmatprep.subr.bf16.mxu0 %v4690_v36 }
 0x130   :  { %4434 = vmatprep.subr.bf16.mxu1 %v4794_v25 }
 0x132   :  { %2846 = vmatpush1.bf16.msra.mxu0 %v4688_v37 }
 0x133   :  { %4435 = vmatpush3.bf16.msra.mxu1 %v4691_v38  ;;  %2847 = vmatprep.subr.bf16.mxu0 %v4694_v52 }
 0x134   :  { %4436 = vmatprep.subr.bf16.mxu1 %v4794_v25 }
 0x136   :  { %2848 = vmatpush1.bf16.msra.mxu0 %v4692_v53 }
 0x137   :  { %4437 = vmatpush3.bf16.msra.mxu1 %v4695_v54  ;;  %2849 = vmatprep.subr.bf16.mxu0 %v4698_v58 }
 0x138   :  { %4438 = vmatprep.subr.bf16.mxu1 %v4794_v25 }
 0x13a   :  { %2850 = vmatpush1.bf16.msra.mxu0 %v4696_v59 }
 0x13b   :  { %4439 = vmatpush3.bf16.msra.mxu1 %v4699_v60  ;;  %2851 = vmatprep.subr.bf16.mxu0 %v4702_v61 }
 0x13c   :  { %4440 = vmatprep.subr.bf16.mxu1 %v4794_v25 }
 0x13e   :  { %2852 = vmatpush1.bf16.msra.mxu0 %v4700_v62 }
 0x13f   :  { %4441 = vmatpush3.bf16.msra.mxu1 %v4703_v63  ;;  %4395 = vmatprep.subr.bf16.mxu0 %v4705_v1 }
 0x140   :  { %4446 = vmatprep.subr.bf16.mxu1 %v4794_v25 }
 0x154   :  { %v4138_v9 = vpop.f32.mrb[0].mxu0 }
 0x155   :  { %v4160_v10 = vpop.f32.mrb[0].mxu1  ;;  %v4139_v11 = vpop.f32.mrb[1].mxu0 }
 0x156   :  { %v4140_v12 = vadd.f32 %v4139_v11, %v4138_v9  ;;  %v4161_v13 = vpop.f32.mrb[1].mxu1  ;;  %v4141_v14 = vpop.f32.mrb[2].mxu0 }
 0x157   :  { %v4162_v15 = vadd.f32 %v4161_v13, %v4160_v10  ;;  %v4163_v16 = vpop.f32.mrb[2].mxu1  ;;  %v4142_v17 = vpop.f32.mrb[3].mxu0 }
 0x158   :  { %v4143_v18 = vadd.f32 %v4142_v17, %v4141_v14  ;;  %v4164_v19 = vpop.f32.mrb[3].mxu1 }
 0x159   :  { %v2243_v20 = vadd.f32 %v4162_v15, %v4140_v12  ;;  %v4165_v21 = vadd.f32 %v4164_v19, %v4163_v16 }
 0x15b   :  { %v2246_v22 = vadd.f32 %v4165_v21, %v4143_v18 }
 0x174   :  { %v4182_v39 = vpop.f32.mrb[4].mxu0 }
 0x175   :  { %v4204_v40 = vpop.f32.mrb[4].mxu1  ;;  %v4183_v41 = vpop.f32.mrb[5].mxu0 }
 0x176   :  { %v4205_v42 = vpop.f32.mrb[5].mxu1  ;;  %v4184_v43 = vadd.f32 %v4183_v41, %v4182_v39  ;;  %v4185_v45 = vpop.f32.mrb[6].mxu0 }
 0x177   :  { %v4206_v44 = vadd.f32 %v4205_v42, %v4204_v40  ;;  %v4207_v46 = vpop.f32.mrb[6].mxu1  ;;  %v4186_v47 = vpop.f32.mrb[7].mxu0 }
 0x178   :  { %v4208_v48 = vpop.f32.mrb[7].mxu1  ;;  %v2284_v49 = vadd.f32 %v4184_v43, %v2243_v20  ;;  %v4187_v50 = vadd.f32 %v4186_v47, %v4185_v45 }
 0x179   :  { %v4209_v51 = vadd.f32 %v4208_v48, %v4207_v46 }
 0x17a   :  { %v2325_v55 = vadd.f32 %v4206_v44, %v2284_v49  ;;  %v2287_v56 = vadd.f32 %v4187_v50, %v2246_v22 }
 0x17c   :  { %v2328_v57 = vadd.f32 %v4209_v51, %v2287_v56 }
 0x194   :  { %v4226_v2 = vpop.f32.mrb[8].mxu0 }
 0x195   :  { %v4248_v3 = vpop.f32.mrb[8].mxu1  ;;  %v4227_v4 = vpop.f32.mrb[9].mxu0 }
 0x196   :  { %v4228_v5 = vadd.f32 %v4227_v4, %v4226_v2  ;;  %v4249_v6 = vpop.f32.mrb[9].mxu1  ;;  %v4229_v7 = vpop.f32.mrb[10].mxu0  ;;  %v4704_v4 = vld [vmem:[#allocation6 + $0x80] sm:$0xff]  }
 0x197   :  { %v4250_v8 = vadd.f32 %v4249_v6, %v4248_v3  ;;  %v4251_v9 = vpop.f32.mrb[10].mxu1  ;;  %v4230_v10 = vpop.f32.mrb[11].mxu0 }
 0x198   :  { %v2366_v11 = vadd.f32 %v4228_v5, %v2325_v55  ;;  %v4231_v12 = vadd.f32 %v4230_v10, %v4229_v7  ;;  %v4252_v13 = vpop.f32.mrb[11].mxu1  ;;  %v4706_v5 = vld [vmem:[#allocation6] sm:$0xff]   ;;  %v4708_v7 = vld [vmem:[#allocation6 + $0x48] sm:$0xff]   ;;  %v4711_v10 = vld [vmem:[#allocation6 + $0x50] sm:$0xff]  }
 0x199   :  { %v4253_v14 = vadd.f32 %v4252_v13, %v4251_v9  ;;  %v4709_v9 = vld [vmem:[#allocation6 + $0x8] sm:$0xff]   ;;  %v4714_v13 = vld [vmem:[#allocation6 + $0x58] sm:$0xff]  }
 0x19a   :  { %v2407_v15 = vadd.f32 %v4250_v8, %v2366_v11  ;;  %v2369_v16 = vadd.f32 %v4231_v12, %v2328_v57  ;;  %v4707_v8 = vld [vmem:[#allocation6 + $0x88] sm:$0xff]   ;;  %v4710_v11 = vld [vmem:[#allocation6 + $0x90] sm:$0xff]  }
 0x19b   :  { %v4712_v12 = vld [vmem:[#allocation6 + $0x10] sm:$0xff]  }
 0x19c   :  { %v2410_v17 = vadd.f32 %v4253_v14, %v2369_v16  ;;  %v4713_v14 = vld [vmem:[#allocation6 + $0x98] sm:$0xff]   ;;  %v4717_v16 = vld [vmem:[#allocation6 + $0x60] sm:$0xff]  }
 0x1b4   :  { %v4270_v18 = vpop.f32.mrb[12].mxu0 }
 0x1b5   :  { %v4292_v19 = vpop.f32.mrb[12].mxu1  ;;  %v4271_v20 = vpop.f32.mrb[13].mxu0 }
 0x1b6   :  { %v4272_v21 = vadd.f32 %v4271_v20, %v4270_v18  ;;  %v4293_v22 = vpop.f32.mrb[13].mxu1  ;;  %v4273_v23 = vpop.f32.mrb[14].mxu0  ;;  %v4718_v18 = vld [vmem:[#allocation6 + $0x20] sm:$0xff]   ;;  %v4719_v20 = vld [vmem:[#allocation6 + $0xa8] sm:$0xff]  }
 0x1b7   :  { %v4294_v24 = vadd.f32 %v4293_v22, %v4292_v19  ;;  %v4295_v26 = vpop.f32.mrb[14].mxu1  ;;  %v4274_v27 = vpop.f32.mrb[15].mxu0  ;;  %v4720_v19 = vld [vmem:[#allocation6 + $0x68] sm:$0xff]   ;;  %v4722_v22 = vld [vmem:[#allocation6 + $0xb0] sm:$0xff]  }
 0x1b8   :  { %v2448_v28 = vadd.f32 %v4272_v21, %v2407_v15  ;;  %v4275_v29 = vadd.f32 %v4274_v27, %v4273_v23  ;;  %v4296_v30 = vpop.f32.mrb[15].mxu1  ;;  %v4715_v15 = vld [vmem:[#allocation6 + $0x18] sm:$0xff]   ;;  %v4721_v21 = vld [vmem:[#allocation6 + $0x28] sm:$0xff]   ;;  %v4723_v23 = vld [vmem:[#allocation6 + $0x70] sm:$0xff]  }
 0x1b9   :  { %v4297_v31 = vadd.f32 %v4296_v30, %v4295_v26  ;;  %v4725_v26 = vld [vmem:[#allocation6 + $0xb8] sm:$0xff]  }
 0x1ba   :  { %v2489_v32 = vadd.f32 %v4294_v24, %v2448_v28  ;;  %v2451_v33 = vadd.f32 %v4275_v29, %v2410_v17  ;;  %v4716_v17 = vld [vmem:[#allocation6 + $0xa0] sm:$0xff]   ;;  %v4724_v24 = vld [vmem:[#allocation6 + $0x30] sm:$0xff]   ;;  %v4726_v27 = vld [vmem:[#allocation6 + $0x78] sm:$0xff]   ;;  %v2694_v29 = vlaneseq }
 0x1bb   :  { %v4727_v28 = vld [vmem:[#allocation6 + $0x38] sm:$0xff]  }
 0x1bc   :  { %v2492_v34 = vadd.f32 %v4297_v31, %v2451_v33  ;;  %v5309_v30 = vshrl.u32 %v2694_v29, 7 }
 0x1be   :  { %v5312_v31 = vsub.s32 2, %v5309_v30  ;;  %v5318_v33 = vsub.s32 0, %v5309_v30 }
 0x1d4   :  { %v4314_v35 = vpop.f32.mrb[16].mxu0 }
 0x1d5   :  { %v4336_v36 = vpop.f32.mrb[16].mxu1  ;;  %v4315_v37 = vpop.f32.mrb[17].mxu0 }
 0x1d6   :  { %v4337_v38 = vpop.f32.mrb[17].mxu1  ;;  %v4316_v39 = vadd.f32 %v4315_v37, %v4314_v35  ;;  %v4317_v41 = vpop.f32.mrb[18].mxu0 }
 0x1d7   :  { %v4338_v40 = vadd.f32 %v4337_v38, %v4336_v36  ;;  %v4339_v42 = vpop.f32.mrb[18].mxu1  ;;  %v4318_v43 = vpop.f32.mrb[19].mxu0 }
 0x1d8   :  { %v4340_v44 = vpop.f32.mrb[19].mxu1  ;;  %v2530_v45 = vadd.f32 %v4316_v39, %v2489_v32  ;;  %v4319_v46 = vadd.f32 %v4318_v43, %v4317_v41  ;;  %v2692_v32 = vld [vmem:[%s5599_s3] sm:$0x7] }
 0x1d9   :  { %v4341_v47 = vadd.f32 %v4340_v44, %v4339_v42  ;;  %v2697_v35 = vrot.slane %v2692_v32, %v5318_v33 }
 0x1da   :  { %v2571_v48 = vadd.f32 %v4338_v40, %v2530_v45  ;;  %v2533_v49 = vadd.f32 %v4319_v46, %v2492_v34  ;;  %v2705_v34 = vrot.slane %v2692_v32, %v5312_v31 }
 0x1dc   :  { %v2574_v50 = vadd.f32 %v4341_v47, %v2533_v49 }
 0x1f4   :  { %v4358_v51 = vpop.f32.mrb[20].mxu0 }
 0x1f5   :  { %v4380_v52 = vpop.f32.mrb[20].mxu1  ;;  %v4359_v53 = vpop.f32.mrb[21].mxu0 }
 0x1f6   :  { %v4360_v54 = vadd.f32 %v4359_v53, %v4358_v51  ;;  %v4381_v55 = vpop.f32.mrb[21].mxu1  ;;  %v4361_v56 = vpop.f32.mrb[22].mxu0 }
 0x1f7   :  { %v4382_v57 = vadd.f32 %v4381_v55, %v4380_v52  ;;  %v4383_v58 = vpop.f32.mrb[22].mxu1  ;;  %v4362_v59 = vpop.f32.mrb[23].mxu0 }
 0x1f8   :  { %v2612_v60 = vadd.f32 %v4360_v54, %v2571_v48  ;;  %v4363_v61 = vadd.f32 %v4362_v59, %v4361_v56  ;;  %v4384_v62 = vpop.f32.mrb[23].mxu1 }
 0x1f9   :  { %v4385_v63 = vadd.f32 %v4384_v62, %v4383_v58 }
 0x1fa   :  { %v2653_v1 = vadd.f32 %v4382_v57, %v2612_v60  ;;  %v2615_v2 = vadd.f32 %v4363_v61, %v2574_v50 }
 0x1fc   :  { %v2656_v3 = vadd.f32 %v4385_v63, %v2615_v2 }
 0x1fe   :  { %v2659_v6 = vpack.c.bf16 %v2656_v3, %v2653_v1 }
 0x200   :  { %2870 = vmatmul.mubr.bf16.vlgmr.msra.gmra.mrb[24].mxu0 %v2659_v6  ;;  %4443 = vmatmul.mubr.bf16.vlgmr.msra.gmra.mrb[24].mxu1 %v2659_v6 }
 0x201   :  { %4447 = vmatpush3.bf16.msra.mxu1 %v4704_v4  ;;  %4396 = vmatpush3.bf16.msra.mxu0 %v4706_v5 }
 0x202   :  { %4448 = vmatprep.subr.bf16.mxu1 %v4794_v25  ;;  %4397 = vmatprep.subr.bf16.mxu0 %v4708_v7 }
 0x203   :  { %4462 = vmatprep.mubr.msk.bf16.mxu1 %vm4796_vm0, %v4794_v25 }
 0x205   :  { %4449 = vmatpush3.bf16.msra.mxu1 %v4707_v8  ;;  %4398 = vmatpush3.bf16.msra.mxu0 %v4709_v9 }
 0x206   :  { %4450 = vmatprep.subr.bf16.mxu1 %v4794_v25  ;;  %4399 = vmatprep.subr.bf16.mxu0 %v4711_v10 }
 0x209   :  { %4451 = vmatpush3.bf16.msra.mxu1 %v4710_v11  ;;  %4400 = vmatpush3.bf16.msra.mxu0 %v4712_v12 }
 0x20a   :  { %4452 = vmatprep.subr.bf16.mxu1 %v4794_v25  ;;  %4401 = vmatprep.subr.bf16.mxu0 %v4714_v13 }
 0x20d   :  { %4453 = vmatpush3.bf16.msra.mxu1 %v4713_v14  ;;  %4402 = vmatpush3.bf16.msra.mxu0 %v4715_v15 }
 0x20e   :  { %4454 = vmatprep.subr.bf16.mxu1 %v4794_v25  ;;  %4403 = vmatprep.subr.bf16.mxu0 %v4717_v16 }
 0x211   :  { %4455 = vmatpush3.bf16.msra.mxu1 %v4716_v17  ;;  %4404 = vmatpush3.bf16.msra.mxu0 %v4718_v18 }
 0x212   :  { %4456 = vmatprep.subr.bf16.mxu1 %v4794_v25  ;;  %4405 = vmatprep.subr.bf16.mxu0 %v4720_v19 }
 0x215   :  { %4457 = vmatpush3.bf16.msra.mxu1 %v4719_v20  ;;  %4406 = vmatpush3.bf16.msra.mxu0 %v4721_v21 }
 0x216   :  { %4458 = vmatprep.subr.bf16.mxu1 %v4794_v25  ;;  %4407 = vmatprep.subr.bf16.mxu0 %v4723_v23 }
 0x219   :  { %4459 = vmatpush3.bf16.msra.mxu1 %v4722_v22  ;;  %4408 = vmatpush3.bf16.msra.mxu0 %v4724_v24 }
 0x21a   :  { %4460 = vmatprep.subr.bf16.mxu1 %v4794_v25  ;;  %4409 = vmatprep.subr.bf16.mxu0 %v4726_v27  ;;  %v5321_v25 = vsub.s32 1, %v5309_v30 }
 0x21c   :  { %v2701_v38 = vrot.slane %v2692_v32, %v5321_v25 }
 0x21d   :  { %4461 = vmatpush3.bf16.msra.mxu1 %v4725_v26  ;;  %4410 = vmatpush3.bf16.msra.mxu0 %v4727_v28 }
 0x2d3   :  { %v2871_v36 = vpop.f32.mrb[24].mxu0  ;;  %v2914_v37 = vpop.f32.mrb[24].mxu1 }
 0x2d4   :  { %v2915_v39 = vadd.f32 %v2914_v37, %v2705_v34  ;;  %v2873_v40 = vpop.f32.mrb[25].mxu0  ;;  %v4444_v41 = vpop.f32.mrb[25].mxu1  ;;  %v2872_v44 = vadd.f32 %v2871_v36, %v2697_v35 }
 0x2d5   :  { %v2875_v42 = vpop.f32.mrb[26].mxu0  ;;  %v2917_v43 = vpop.f32.mrb[26].mxu1  ;;  %v2874_v49 = vadd.f32 %v2873_v40, %v2701_v38 }
 0x2d6   :  { %4058 = vst [vmem:[%s5603_s7 + $0x10] sm:$0xff] %v2915_v39  ;;  %v2876_v45 = vadd.f32 %v2875_v42, %v2697_v35  ;;  %v2918_v46 = vadd.f32 %v2917_v43, %v2705_v34  ;;  %v2877_v47 = vpop.f32.mrb[27].mxu0  ;;  %v4445_v48 = vpop.f32.mrb[27].mxu1 }
 0x2d7   :  { %v2878_v50 = vadd.f32 %v2877_v47, %v2701_v38 }
 0x2d8   :  { %v2924_v51 = vpack.c.bf16 %v2876_v45, %v2872_v44  ;;  %4059 = vst [vmem:[%s5603_s7 + $0x18] sm:$0xff] %v2918_v46  ;;  %v2926_v52 = vpack.c.bf16 %v2918_v46, %v2915_v39 }
 0x2d9   :  { %v2925_v53 = vpack.c.bf16 %v2878_v50, %v2874_v49 }
 0x2da   :  { %4463 = vmatmul.mubr.bf16.vlgmr.msra.gmra.mrb[28].mxu1 %v2926_v52 }
 0x2db   :  { %3151 = vmatprep.mubr.bf16.mxu0 %v2925_v53 }
 0x2dc   :  { %3152 = vmatmul.mubr.bf16.vlgmr.msra.gmra.mrb[28].mxu0 %v2924_v51 }
 0x3ad   :  { %v3194_v54 = vpop.f32.mrb[28].mxu1 }
 0x3ae   :  { %v4464_v55 = vpop.f32.mrb[29].mxu1 }
 0x3af   :  { %v4411_v56 = vpop.f32.mrb[28].mxu0  ;;  %v3197_v57 = vpop.f32.mrb[30].mxu1 }
 0x3b0   :  { %v4412_v58 = vpop.f32.mrb[29].mxu0  ;;  %v4465_v59 = vpop.f32.mrb[31].mxu1 }
 0x3b1   :  { %v4413_v60 = vadd.f32 %v4412_v58, %v4411_v56  ;;  %v4414_v61 = vpop.f32.mrb[30].mxu0 }
 0x3b2   :  { %v4415_v62 = vpop.f32.mrb[31].mxu0 }
 0x3b3   :  { %v5332_v63 = vadd.f32 %v4413_v60, %v3194_v54  ;;  %v4416_v1 = vadd.f32 %v4415_v62, %v4414_v61 }
 0x3b5   :  { %3201 = vst [vmem:[%s5603_s7] sm:$0xff] %v5332_v63  ;;  %v5338_v2 = vadd.f32 %v4416_v1, %v3197_v57 }
 0x3b7   :  { %3202 = vst [vmem:[%s5603_s7 + $0x8] sm:$0xff] %v5338_v2 }
 0x3b8   :  { %4788 = dma.done.wait [#allocation3], 6144 }
 0x3b9   :  { %4789 = vsyncadd [#allocation3], 4294961152  ;;  %v5346_v3 = vpack.c.bf16 %v5338_v2, %v5332_v63  ;;  %3344 = vmatprep.mubr.bf16.mxu1 %v4795_v0  ;;  %3301 = vmatprep.mubr.bf16.mxu0 %v4795_v0  ;;  %v4797_v4 = vmov 58   ;;  %v3210_v5 = vld [vmem:[#allocation2 + $0x8] sm:$0xff]  ;;  %v3212_v6 = vld [vmem:[#allocation2 + $0x18] sm:$0xff]  ;;  %v4798_v15 = vmov 59  }
 0x3ba   :  { %4729 = vset.pattern.permute.xlu1 %v4797_v4  ;;  %4728 = vset.pattern.permute.xlu0 %v4797_v4  ;;  %v3209_v7 = vld [vmem:[#allocation2] sm:$0xff]  ;;  %v3211_v8 = vld [vmem:[#allocation2 + $0x10] sm:$0xff]  ;;  %v3216_v9 = vld [vmem:[#allocation2 + $0x38] sm:$0xff]  ;;  %v4799_v16 = vmov 60   ;;  %v4800_v21 = vmov 122   ;;  %vm3265_vm1 = vcmask 523264  }
 0x3bb   :  { %3556 = vrot.lane.b32.xlu0 %v5346_v3, %s4791_s15  ;;  %3405 = vperm.xlu1 %4729, %v5338_v2   ;;  %v3218_v10 = vld [vmem:[#allocation2 + $0x48] sm:$0xff]  ;;  %v3215_v11 = vld [vmem:[#allocation2 + $0x30] sm:$0xff]  ;;  %v3217_v12 = vld [vmem:[#allocation2 + $0x40] sm:$0xff]  ;;  %v4801_v32 = vmov 123   ;;  %v4802_v49 = vmov 124   ;;  %v4803_v55 = vmov 20  }
 0x3bc   :  { %3269 = vmatprep.subr.bf16.mxu0 %v3210_v5  ;;  %3312 = vmatprep.subr.bf16.mxu1 %v3212_v6  ;;  %v3222_v13 = vld [vmem:[#allocation2 + $0x68] sm:$0xff]  ;;  %v3224_v14 = vld [vmem:[#allocation2 + $0x78] sm:$0xff]  ;;  %v3221_v17 = vld [vmem:[#allocation2 + $0x60] sm:$0xff] }
 0x3bd   :  { %3270 = vmatpush1.bf16.msra.mxu0 %v3209_v7  ;;  %3313 = vmatpush1.bf16.msra.mxu1 %v3211_v8  ;;  %v3223_v18 = vld [vmem:[#allocation2 + $0x70] sm:$0xff]  ;;  %v3228_v19 = vld [vmem:[#allocation2 + $0x98] sm:$0xff]  ;;  %v3230_v20 = vld [vmem:[#allocation2 + $0xa8] sm:$0xff] }
 0x3be   :  { %3271 = vmatprep.subr.bf16.mxu0 %v3216_v9  ;;  %3314 = vmatprep.subr.bf16.mxu1 %v3218_v10  ;;  %v3227_v22 = vld [vmem:[#allocation2 + $0x90] sm:$0xff]  ;;  %v3229_v23 = vld [vmem:[#allocation2 + $0xa0] sm:$0xff]  ;;  %v3214_v24 = vld [vmem:[#allocation2 + $0x28] sm:$0xff] }
 0x3bf   :  { %3400 = vperm.xlu0 %4728, %v5332_v63   ;;  %4730 = vset.pattern.permute.xlu1 %v4798_v15  ;;  %v3499_v26 = vld [vmem:[#allocation2 + $0xc8] sm:$0xff]  ;;  %v3213_v27 = vld [vmem:[#allocation2 + $0x20] sm:$0xff]  ;;  %v3220_v28 = vld [vmem:[#allocation2 + $0x58] sm:$0xff] }
 0x3c0   :  { %3411 = vperm.xlu1 %4730, %v5332_v63   ;;  %v3498_v29 = vld [vmem:[#allocation2 + $0xc0] sm:$0xff]  ;;  %v3505_v34 = vld [vmem:[#allocation2 + $0xf8] sm:$0xff]  ;;  %v3219_v35 = vld [vmem:[#allocation2 + $0x50] sm:$0xff] }
 0x3c1   :  { %3272 = vmatpush1.bf16.msra.mxu0 %v3215_v11  ;;  %3315 = vmatpush1.bf16.msra.mxu1 %v3217_v12  ;;  %v3226_v36 = vld [vmem:[#allocation2 + $0x88] sm:$0xff]  ;;  %v3504_v37 = vld [vmem:[#allocation2 + $0xf0] sm:$0xff]  ;;  %v3225_v39 = vld [vmem:[#allocation2 + $0x80] sm:$0xff] }
 0x3c2   :  { %3273 = vmatprep.subr.bf16.mxu0 %v3222_v13  ;;  %3316 = vmatprep.subr.bf16.mxu1 %v3224_v14  ;;  %v3511_v38 = vld [vmem:[#allocation2 + $0x128] sm:$0xff]  ;;  %v3232_v40 = vld [vmem:[#allocation2 + $0xb8] sm:$0xff]  ;;  %v3510_v41 = vld [vmem:[#allocation2 + $0x120] sm:$0xff] }
 0x3c3   :  { %4731 = vset.pattern.permute.xlu0 %v4799_v16  ;;  %v3517_v42 = vld [vmem:[#allocation2 + $0x158] sm:$0xff]  ;;  %v3231_v43 = vld [vmem:[#allocation2 + $0xb0] sm:$0xff]  ;;  %v3503_v46 = vld [vmem:[#allocation2 + $0xe8] sm:$0xff] }
 0x3c4   :  { %3425 = vperm.xlu0 %4731, %v5332_v63   ;;  %3415 = vperm.xlu1 %4730, %v5338_v2   ;;  %v3501_v44 = vld [vmem:[#allocation2 + $0xd8] sm:$0xff]  ;;  %v3516_v45 = vld [vmem:[#allocation2 + $0x150] sm:$0xff]  ;;  %v3507_v48 = vld [vmem:[#allocation2 + $0x108] sm:$0xff] }
 0x3c5   :  { %3274 = vmatpush1.bf16.msra.mxu0 %v3221_v17  ;;  %3317 = vmatpush1.bf16.msra.mxu1 %v3223_v18  ;;  %v3500_v47 = vld [vmem:[#allocation2 + $0xd0] sm:$0xff]  ;;  %v3506_v50 = vld [vmem:[#allocation2 + $0x100] sm:$0xff]  ;;  %v3513_v51 = vld [vmem:[#allocation2 + $0x138] sm:$0xff] }
 0x3c6   :  { %3275 = vmatprep.subr.bf16.mxu0 %v3228_v19  ;;  %3318 = vmatprep.subr.bf16.mxu1 %v3230_v20  ;;  %v3512_v52 = vld [vmem:[#allocation2 + $0x130] sm:$0xff]  ;;  %v3519_v53 = vld [vmem:[#allocation2 + $0x168] sm:$0xff]  ;;  %v3518_v54 = vld [vmem:[#allocation2 + $0x160] sm:$0xff] }
 0x3c7   :  { %v3502_v56 = vld [vmem:[#allocation2 + $0xe0] sm:$0xff]  ;;  %v3509_v58 = vld [vmem:[#allocation2 + $0x118] sm:$0xff]  ;;  %v3508_v59 = vld [vmem:[#allocation2 + $0x110] sm:$0xff] }
 0x3c8   :  { %4733 = vset.pattern.permute.xlu0 %v4800_v21  ;;  %4732 = vset.pattern.permute.xlu1 %v4799_v16  ;;  %v3515_v60 = vld [vmem:[#allocation2 + $0x148] sm:$0xff]  ;;  %v3514_v61 = vld [vmem:[#allocation2 + $0x140] sm:$0xff]  ;;  %v3521_v62 = vld [vmem:[#allocation2 + $0x178] sm:$0xff] }
 0x3c9   :  { %3691 = vperm.xlu0 %4733, %v5332_v63   ;;  %3276 = vmatpush1.bf16.msra.mxu0 %v3227_v22  ;;  %v3257_v22 = vsub.s32 5, %v5309_v30 }
 0x3ca   :  { %3319 = vmatpush1.bf16.msra.mxu1 %v3229_v23  ;;  %3355 = vmatprep.subr.bf16.mxu0 %v3214_v24 }
 0x3cb   :  { %3561 = vmatprep.subr.bf16.mxu1 %v3499_v26  ;;  %3429 = vperm.xlu1 %4732, %v5338_v2  }
 0x3cc   :  { %4084 = vmatmul.mubr.msk.bf16.vlgmr.msra.gmra.mrb[32].mxu0 %vm3265_vm1, %v5346_v3 }
 0x3cd   :  { %4736 = vset.pattern.permute.xlu0 %v4801_v32  ;;  %4085 = vmatmul.mubr.msk.bf16.vlgmr.msra.gmra.mrb[32].mxu1 %vm3265_vm1, %v5346_v3 }
 0x3ce   :  { %3356 = vmatpush1.bf16.msra.mxu0 %v3213_v27  ;;  %3387 = vmatprep.mubr.bf16.mxu0 %v4795_v0 }
 0x3cf   :  { %3357 = vmatprep.subr.bf16.mxu0 %v3220_v28  ;;  %3562 = vmatpush1.bf16.msra.mxu1 %v3498_v29 }
 0x3d0   :  { %3563 = vmatprep.subr.bf16.mxu1 %v3505_v34  ;;  %3593 = vmatprep.mubr.bf16.mxu1 %v4795_v0 }
 0x3d1   :  { %4734 = vset.pattern.permute.xlu1 %v4800_v21  ;;  %3705 = vperm.xlu0 %4736, %v5338_v2   ;;  %v3253_v21 = vsub.s32 4, %v5309_v30 }
 0x3d2   :  { %3358 = vmatpush1.bf16.msra.mxu0 %v3219_v35  ;;  %3695 = vperm.xlu1 %4734, %v5338_v2  }
 0x3d3   :  { %3359 = vmatprep.subr.bf16.mxu0 %v3226_v36  ;;  %3564 = vmatpush1.bf16.msra.mxu1 %v3504_v37 }
 0x3d4   :  { %3565 = vmatprep.subr.bf16.mxu1 %v3511_v38 }
 0x3d5   :  { %4739 = vset.pattern.permute.xlu0 %v4803_v55 }
 0x3d6   :  { %3360 = vmatpush1.bf16.msra.mxu0 %v3225_v39  ;;  %4735 = vset.pattern.permute.xlu1 %v4801_v32 }
 0x3d7   :  { %3361 = vmatprep.subr.bf16.mxu0 %v3232_v40  ;;  %3566 = vmatpush1.bf16.msra.mxu1 %v3510_v41 }
 0x3d8   :  { %3567 = vmatprep.subr.bf16.mxu1 %v3517_v42  ;;  %3701 = vperm.xlu1 %4735, %v5332_v63  }
 0x3da   :  { %3362 = vmatpush1.bf16.msra.mxu0 %v3231_v43  ;;  %v5437_v43 = vld [vmem:[%s5601_s5 + $0x6] sm:$0x3f] }
 0x3db   :  { %3604 = vmatprep.subr.bf16.mxu0 %v3501_v44  ;;  %3568 = vmatpush1.bf16.msra.mxu1 %v3516_v45 }
 0x3dc   :  { %3647 = vmatprep.subr.bf16.mxu1 %v3503_v46  ;;  %4737 = vset.pattern.permute.xlu1 %v4802_v49 }
 0x3dd   :  { %4086 = vmatmul.mubr.msk.bf16.vlgmr.msra.gmra.mrb[36].mxu0 %vm3265_vm1, %v5346_v3  ;;  %3716 = vperm.xlu1 %4737, %v5332_v63   ;;  %v3520_v63 = vld [vmem:[#allocation2 + $0x170] sm:$0xff] }
 0x3de   :  { %3605 = vmatpush1.bf16.msra.mxu0 %v3500_v47  ;;  %3636 = vmatprep.mubr.bf16.mxu0 %v4795_v0 }
 0x3df   :  { %3606 = vmatprep.subr.bf16.mxu0 %v3507_v48 }
 0x3e1   :  { %3720 = vperm.xlu1 %4737, %v5338_v2   ;;  %v3249_v2 = vsub.s32 3, %v5309_v30 }
 0x3e2   :  { %3607 = vmatpush1.bf16.msra.mxu0 %v3506_v50 }
 0x3e3   :  { %3608 = vmatprep.subr.bf16.mxu0 %v3513_v51  ;;  %v3540_v44 = vrot.slane %v5437_v43, %v3249_v2 }
 0x3e5   :  { %4738 = vset.pattern.permute.xlu1 %v4803_v55 }
 0x3e6   :  { %3609 = vmatpush1.bf16.msra.mxu0 %v3512_v52 }
 0x3e7   :  { %3610 = vmatprep.subr.bf16.mxu0 %v3519_v53 }
 0x3ea   :  { %3611 = vmatpush1.bf16.msra.mxu0 %v3518_v54 }
 0x42d   :  { %v3557_v57 = vpop.permute.xlu0 %3556 }
 0x42e   :  { %4102 = vmatmul.mubr.msk.bf16.vlgmr.msra.gmra.mrb[36].mxu1 %vm3265_vm1, %v3557_v57  ;;  %4103 = vmatmul.mubr.msk.bf16.vlgmr.msra.gmra.mrb[40].mxu0 %vm3265_vm1, %v3557_v57 }
 0x42f   :  { %3648 = vmatpush1.bf16.msra.mxu1 %v3502_v56  ;;  %3679 = vmatprep.mubr.bf16.mxu1 %v4795_v0  ;;  %v5381_v0 = vld [vmem:[%s5601_s5] sm:$0x3f] }
 0x430   :  { %3649 = vmatprep.subr.bf16.mxu1 %v3509_v58  ;;  %v3250_v3 = vrot.slane %v5381_v0, %v3249_v2  ;;  %v3254_v23 = vrot.slane %v5381_v0, %v3253_v21  ;;  %v3258_v24 = vrot.slane %v5381_v0, %v3257_v22 }
 0x433   :  { %3650 = vmatpush1.bf16.msra.mxu1 %v3508_v59 }
 0x434   :  { %3651 = vmatprep.subr.bf16.mxu1 %v3515_v60 }
 0x437   :  { %3652 = vmatpush1.bf16.msra.mxu1 %v3514_v61 }
 0x438   :  { %3653 = vmatprep.subr.bf16.mxu1 %v3521_v62  ;;  %v3544_v62 = vrot.slane %v5437_v43, %v3253_v21 }
 0x43a   :  { %v3406_v1 = vpop.permute.xlu1 %3405 }
 0x43b   :  { %3654 = vmatpush1.bf16.msra.mxu1 %v3520_v63 }
 0x43e   :  { %4104 = vmatmul.mubr.msk.bf16.vlgmr.msra.gmra.mrb[40].mxu1 %vm3265_vm1, %v3557_v57  ;;  %v3401_v5 = vpop.permute.xlu0 %3400 }
 0x43f   :  { %v3412_v4 = vpop.permute.xlu1 %3411 }
 0x443   :  { %v3416_v17 = vpop.permute.xlu1 %3415  ;;  %v3426_v34 = vpop.permute.xlu0 %3425 }
 0x448   :  { %v3692_v45 = vpop.permute.xlu0 %3691 }
 0x44a   :  { %v3430_v40 = vpop.permute.xlu1 %3429 }
 0x450   :  { %v3706_v58 = vpop.permute.xlu0 %3705 }
 0x451   :  { %v3696_v42 = vpop.permute.xlu1 %3695 }
 0x457   :  { %v3702_v46 = vpop.permute.xlu1 %3701 }
 0x45c   :  { %v3717_v63 = vpop.permute.xlu1 %3716 }
 0x49f   :  { %v5386_v7 = vpop.f32.mrb[32].mxu0 }
 0x4a0   :  { %v5384_v6 = vpop.f32.mrb[32].mxu1  ;;  %v5388_v9 = vpop.f32.mrb[33].mxu0 }
 0x4a1   :  { %v3348_v8 = vpop.f32.mrb[33].mxu1  ;;  %v5394_v12 = vpop.f32.mrb[34].mxu0 }
 0x4a2   :  { %v5390_v10 = vadd.f32 %v3348_v8, %v3250_v3  ;;  %v5392_v11 = vpop.f32.mrb[34].mxu1  ;;  %v5396_v14 = vpop.f32.mrb[35].mxu0 }
 0x4a3   :  { %v3352_v13 = vpop.f32.mrb[35].mxu1 }
 0x4a4   :  { %3439 = vperm.xlu1 %4738, %v5390_v10   ;;  %v5399_v15 = vadd.f32 %v3352_v13, %v3250_v3  ;;  %v3408_v16 = vmul.f32 %v3401_v5, %v5390_v10  ;;  %v3548_v3 = vrot.slane %v5437_v43, %v3257_v22 }
 0x4a6   :  { %v3409_v18 = vmul.f32 %v3406_v1, %v5399_v15  ;;  %v3418_v19 = vadd.f32 %v3412_v4, %v3408_v16 }
 0x4a8   :  { %3444 = vperm.xlu1 %4738, %v5399_v15   ;;  %3420 = vst [vmem:[%s5604_s8] sm:$0xff] %v3418_v19  ;;  %v3419_v20 = vadd.f32 %v3416_v17, %v3409_v18  ;;  %v3721_v17 = vpop.permute.xlu1 %3720 }
 0x4aa   :  { %3421 = vst [vmem:[%s5604_s8 + $0x8] sm:$0xff] %v3419_v20 }
 0x4b0   :  { %v3389_v26 = vpop.f32.mrb[36].mxu0 }
 0x4b1   :  { %v5414_v27 = vadd.f32 %v3389_v26, %v3254_v23  ;;  %v3391_v28 = vpop.f32.mrb[37].mxu0 }
 0x4b2   :  { %v5416_v29 = vadd.f32 %v3391_v28, %v3258_v24  ;;  %v3393_v32 = vpop.f32.mrb[38].mxu0 }
 0x4b3   :  { %v5418_v35 = vadd.f32 %v3393_v32, %v3254_v23  ;;  %3454 = vperm.xlu0 %4739, %v5414_v27   ;;  %v3395_v30 = vpop.f32.mrb[39].mxu0  ;;  %v3422_v36 = vmul.f32 %v3401_v5, %v5414_v27  ;;  %v3238_v23 = vrot.slane %v5381_v0, %v5318_v33 }
 0x4b4   :  { %v5422_v37 = vadd.f32 %v3395_v30, %v3258_v24  ;;  %3469 = vperm.xlu1 %4738, %v5416_v29  }
 0x4b5   :  { %v3423_v38 = vmul.f32 %v3406_v1, %v5418_v35  ;;  %v3432_v39 = vadd.f32 %v3426_v34, %v3422_v36  ;;  %v3304_v24 = vadd.f32 %v5386_v7, %v3238_v23  ;;  %v3308_v34 = vadd.f32 %v5394_v12, %v3238_v23 }
 0x4b6   :  { %v3242_v7 = vrot.slane %v5381_v0, %v5321_v25 }
 0x4b7   :  { %3474 = vperm.xlu0 %4739, %v5422_v37   ;;  %v3433_v41 = vadd.f32 %v3430_v40, %v3423_v38  ;;  %4087 = vst [vmem:[%s5604_s8 + $0x10] sm:$0xff] %v3432_v39 }
 0x4b8   :  { %3459 = vperm.xlu1 %4738, %v5418_v35   ;;  %v3306_v12 = vadd.f32 %v5388_v9, %v3242_v7 }
 0x4b9   :  { %4088 = vst [vmem:[%s5604_s8 + $0x18] sm:$0xff] %v3433_v41 }
 0x501   :  { %v5440_v47 = vpop.f32.mrb[36].mxu1  ;;  %v5442_v48 = vpop.f32.mrb[40].mxu0 }
 0x502   :  { %v5444_v49 = vpop.f32.mrb[37].mxu1  ;;  %v3640_v50 = vpop.f32.mrb[41].mxu0 }
 0x503   :  { %v5446_v51 = vadd.f32 %v3640_v50, %v3540_v44  ;;  %v5448_v52 = vpop.f32.mrb[38].mxu1  ;;  %v5450_v53 = vpop.f32.mrb[42].mxu0 }
 0x504   :  { %v5452_v54 = vpop.f32.mrb[39].mxu1  ;;  %v3644_v55 = vpop.f32.mrb[43].mxu0 }
 0x505   :  { %v3698_v56 = vmul.f32 %v3692_v45, %v5446_v51  ;;  %v5455_v57 = vadd.f32 %v3644_v55, %v3540_v44  ;;  %3730 = vperm.xlu0 %4739, %v5446_v51  }
 0x507   :  { %v3708_v59 = vadd.f32 %v3702_v46, %v3698_v56  ;;  %3735 = vperm.xlu1 %4738, %v5455_v57   ;;  %v3699_v60 = vmul.f32 %v3696_v42, %v5455_v57 }
 0x509   :  { %4105 = vst [vmem:[%s5604_s8 + $0x20] sm:$0xff] %v3708_v59  ;;  %v3709_v61 = vadd.f32 %v3706_v58, %v3699_v60 }
 0x50b   :  { %4106 = vst [vmem:[%s5604_s8 + $0x28] sm:$0xff] %v3709_v61 }
 0x511   :  { %v3681_v1 = vpop.f32.mrb[40].mxu1 }
 0x512   :  { %v5467_v2 = vadd.f32 %v3681_v1, %v3544_v62  ;;  %v3683_v4 = vpop.f32.mrb[41].mxu1 }
 0x513   :  { %v3685_v5 = vpop.f32.mrb[42].mxu1  ;;  %v5474_v18 = vadd.f32 %v3683_v4, %v3548_v3 }
 0x514   :  { %v3713_v8 = vmul.f32 %v3692_v45, %v5467_v2  ;;  %v5471_v13 = vadd.f32 %v3685_v5, %v3544_v62  ;;  %v3687_v16 = vpop.f32.mrb[43].mxu1  ;;  %3745 = vperm.xlu1 %4738, %v5467_v2  }
 0x515   :  { %v5481_v21 = vadd.f32 %v3687_v16, %v3548_v3 }
 0x516   :  { %v3723_v19 = vadd.f32 %v3717_v63, %v3713_v8  ;;  %3750 = vperm.xlu0 %4739, %v5471_v13   ;;  %v3714_v20 = vmul.f32 %v3696_v42, %v5471_v13 }
 0x518   :  { %4107 = vst [vmem:[%s5604_s8 + $0x30] sm:$0xff] %v3723_v19  ;;  %v3724_v22 = vadd.f32 %v3721_v17, %v3714_v20  ;;  %3760 = vperm.xlu1 %4738, %v5474_v18  }
 0x51a   :  { %4108 = vst [vmem:[%s5604_s8 + $0x38] sm:$0xff] %v3724_v22  ;;  %3765 = vperm.xlu0 %4739, %v5481_v21  }
 0x523   :  { %v3440_v26 = vpop.permute.xlu1 %3439 }
 0x524   :  { %v3447_v28 = vsub.f32 %v5390_v10, %v3440_v26  ;;  %v3482_v32 = vsub.f32 %v3304_v24, %v3440_v26  ;;  %v3246_v10 = vrot.slane %v5381_v0, %v5312_v31  ;;  %v3310_v0 = vadd.f32 %v5396_v14, %v3242_v7 }
 0x525   :  { %v3528_v14 = vrot.slane %v5437_v43, %v5318_v33 }
 0x526   :  { %4089 = vst [vmem:[%s5604_s8 + $0x40] sm:$0xff] %v3447_v28  ;;  %4095 = vst [vmem:[%s5604_s8 + $0xa0] sm:$0xff] %v3482_v32  ;;  %v3347_v39 = vadd.f32 %v5384_v6, %v3246_v10  ;;  %v3351_v46 = vadd.f32 %v5392_v11, %v3246_v10 }
 0x527   :  { %v3445_v30 = vpop.permute.xlu1 %3444  ;;  %v3600_v55 = vadd.f32 %v5448_v52, %v3528_v14 }
 0x528   :  { %v3448_v36 = vsub.f32 %v5399_v15, %v3445_v30  ;;  %v3483_v38 = vsub.f32 %v3308_v34, %v3445_v30 }
 0x52a   :  { %4090 = vst [vmem:[%s5604_s8 + $0x48] sm:$0xff] %v3448_v36  ;;  %4096 = vst [vmem:[%s5604_s8 + $0xa8] sm:$0xff] %v3483_v38 }
 0x532   :  { %v3455_v15 = vpop.permute.xlu0 %3454 }
 0x533   :  { %v3462_v40 = vsub.f32 %v5414_v27, %v3455_v15  ;;  %v3487_v41 = vsub.f32 %v3306_v12, %v3455_v15  ;;  %v3470_v42 = vpop.permute.xlu1 %3469 }
 0x534   :  { %v3477_v44 = vsub.f32 %v5416_v29, %v3470_v42  ;;  %v3492_v45 = vsub.f32 %v3347_v39, %v3470_v42 }
 0x535   :  { %4091 = vst [vmem:[%s5604_s8 + $0x50] sm:$0xff] %v3462_v40  ;;  %4097 = vst [vmem:[%s5604_s8 + $0xb0] sm:$0xff] %v3487_v41 }
 0x536   :  { %4093 = vst [vmem:[%s5604_s8 + $0x60] sm:$0xff] %v3477_v44  ;;  %4099 = vst [vmem:[%s5604_s8 + $0xc0] sm:$0xff] %v3492_v45  ;;  %v3475_v6 = vpop.permute.xlu0 %3474 }
 0x537   :  { %v3478_v9 = vsub.f32 %v5422_v37, %v3475_v6  ;;  %v3493_v11 = vsub.f32 %v3351_v46, %v3475_v6  ;;  %v3460_v27 = vpop.permute.xlu1 %3459 }
 0x538   :  { %v3463_v29 = vsub.f32 %v5418_v35, %v3460_v27  ;;  %v3488_v50 = vsub.f32 %v3310_v0, %v3460_v27  ;;  %v3596_v35 = vadd.f32 %v5440_v47, %v3528_v14  ;;  %v3532_v47 = vrot.slane %v5437_v43, %v5321_v25 }
 0x539   :  { %4094 = vst [vmem:[%s5604_s8 + $0x68] sm:$0xff] %v3478_v9  ;;  %4100 = vst [vmem:[%s5604_s8 + $0xc8] sm:$0xff] %v3493_v11 }
 0x53a   :  { %4092 = vst [vmem:[%s5604_s8 + $0x58] sm:$0xff] %v3463_v29  ;;  %4098 = vst [vmem:[%s5604_s8 + $0xb8] sm:$0xff] %v3488_v50  ;;  %v3598_v52 = vadd.f32 %v5444_v49, %v3532_v47 }
 0x584   :  { %v3731_v37 = vpop.permute.xlu0 %3730 }
 0x585   :  { %v3738_v56 = vsub.f32 %v5446_v51, %v3731_v37  ;;  %v3773_v58 = vsub.f32 %v3596_v35, %v3731_v37  ;;  %v3536_v51 = vrot.slane %v5437_v43, %v5312_v31 }
 0x586   :  { %v3736_v59 = vpop.permute.xlu1 %3735 }
 0x587   :  { %4109 = vst [vmem:[%s5604_s8 + $0x70] sm:$0xff] %v3738_v56  ;;  %4115 = vst [vmem:[%s5604_s8 + $0xd0] sm:$0xff] %v3773_v58  ;;  %v3739_v60 = vsub.f32 %v5455_v57, %v3736_v59  ;;  %v3774_v33 = vsub.f32 %v3600_v55, %v3736_v59  ;;  %v3602_v57 = vadd.f32 %v5452_v54, %v3532_v47 }
 0x588   :  { %v3639_v3 = vadd.f32 %v5442_v48, %v3536_v51  ;;  %v3643_v49 = vadd.f32 %v5450_v53, %v3536_v51 }
 0x589   :  { %4110 = vst [vmem:[%s5604_s8 + $0x78] sm:$0xff] %v3739_v60  ;;  %4116 = vst [vmem:[%s5604_s8 + $0xd8] sm:$0xff] %v3774_v33 }
 0x593   :  { %v3746_v61 = vpop.permute.xlu1 %3745 }
 0x594   :  { %v3753_v62 = vsub.f32 %v5467_v2, %v3746_v61  ;;  %v3778_v63 = vsub.f32 %v3598_v52, %v3746_v61 }
 0x595   :  { %v3751_v1 = vpop.permute.xlu0 %3750 }
 0x596   :  { %4111 = vst [vmem:[%s5604_s8 + $0x80] sm:$0xff] %v3753_v62  ;;  %4117 = vst [vmem:[%s5604_s8 + $0xe0] sm:$0xff] %v3778_v63  ;;  %v3754_v31 = vsub.f32 %v5471_v13, %v3751_v1  ;;  %v3779_v25 = vsub.f32 %v3602_v57, %v3751_v1 }
 0x597   :  { %v3761_v43 = vpop.permute.xlu1 %3760 }
 0x598   :  { %4112 = vst [vmem:[%s5604_s8 + $0x88] sm:$0xff] %v3754_v31  ;;  %4118 = vst [vmem:[%s5604_s8 + $0xe8] sm:$0xff] %v3779_v25  ;;  %v3768_v48 = vsub.f32 %v5474_v18, %v3761_v43  ;;  %v3783_v54 = vsub.f32 %v3639_v3, %v3761_v43 }
 0x599   :  { %v3766_v2 = vpop.permute.xlu0 %3765 }
 0x59a   :  { %4113 = vst [vmem:[%s5604_s8 + $0x90] sm:$0xff] %v3768_v48  ;;  %4119 = vst [vmem:[%s5604_s8 + $0xf0] sm:$0xff] %v3783_v54  ;;  %v3769_v53 = vsub.f32 %v5481_v21, %v3766_v2  ;;  %v3784_v4 = vsub.f32 %v3643_v49, %v3766_v2 }
 0x59c   :  { %4114 = vst [vmem:[%s5604_s8 + $0x98] sm:$0xff] %v3769_v53  ;;  %4120 = vst [vmem:[%s5604_s8 + $0xf8] sm:$0xff] %v3784_v4 }
 0x59d   :  { %3796 = vsyncpa [#allocation5], 1 }
 0x59e   :  { %3797 = vsyncpa [#allocation7], 1 }
 0x59f   :  { %3798 = vsyncmov [#allocation3] }
 0x5a2   :  { %s3799_s12 = vpop.sfrf %3798 }
 0x5a3   :  { %p4121_p2 = scmp.ne.s32.totalorder %s3799_s12, 0 }
 0x5a5   :  { %3803 = shalt.err (%p4121_p2)  }

</bundles_post_ra>
